<compile_context>
chip_gen: v5e
topology: v5e:2x2
jax: 0.10.0
libtpu: 0.0.40
codegen_flags: <defaults>
</compile_context>

<pallas_src>
import functools
from typing import NamedTuple

import numpy as np
import jax
import jax.numpy as jnp
from jax.experimental import pallas as pl
from jax.experimental.pallas import tpu as pltpu


_PAD_BATCH = -1e9      # sentinel batch id for padded query lanes (never matches)
_BIG = 1e30            # "infinite" squared distance for other-batch / padded lanes
_MASKED = 2e30         # strictly larger than any packed _BIG entry (masks picked cols)
_LANE = 128


def _round_up(x, m):
    return ((int(x) + m - 1) // m) * m


def _vmem_capacity_bytes():
    try:
        info = pltpu.get_tpu_info()
        cap = int(getattr(info, "vmem_capacity_bytes", 0))
    except Exception:
        cap = 0
    return max(cap, 64 * 1024 * 1024)      # conservative floor (v7x per-TC VMEM)


# ----------------------------------------------------------------------------
# Kernel 1: voxel index -> voxel-center coordinates (lane-dense over voxels)
#   out[r, :] = idx[r, :] * scale[r] + offset[r],  rows r = {batch, x, y, z}
# ----------------------------------------------------------------------------
def _vertice_kernel(idx_ref, scale_ref, offset_ref, out_ref):
    out_ref[...] = idx_ref[...] * scale_ref[...] + offset_ref[...]


def voxel_indices_to_points(indices, scale, offset, *, lane_tile=65536):
    """indices: (M, 4) int [b, x, y, z]. Returns voxel-center bxyz (M, 4) f32."""
    m = int(indices.shape[0])
    num_tiles = max(1, -(-m // lane_tile))
    mt = _round_up(-(-m // num_tiles), _LANE)      # coarse, lane-dense tiles
    mp = mt * num_tiles
    idx_t = jnp.pad(jnp.transpose(indices.astype(jnp.float32)),
                    ((0, 0), (0, mp - m)))                          # (4, Mp)
    scale2 = jnp.asarray(scale, jnp.float32).reshape(4, 1)
    offset2 = jnp.asarray(offset, jnp.float32).reshape(4, 1)

    out_t = pl.pallas_call(
        _vertice_kernel,
        out_shape=jax.ShapeDtypeStruct((4, mp), jnp.float32),
        grid=(num_tiles,),
        in_specs=[pl.BlockSpec((4, mt), lambda i: (0, i)),
                  pl.BlockSpec((4, 1), lambda i: (0, 0)),
                  pl.BlockSpec((4, 1), lambda i: (0, 0))],
        out_specs=pl.BlockSpec((4, mt), lambda i: (0, i)),
        compiler_params=pltpu.CompilerParams(
            dimension_semantics=("parallel",)),
    )(idx_t, scale2, offset2)
    return jnp.transpose(out_t[:, :m])                              # (M, 4)


# ----------------------------------------------------------------------------
# Kernel 2: fused voxel decode + three_nn + three_interpolate for one tile of
#           target points.
# ----------------------------------------------------------------------------
def _three_interp_kernel(tgt_ref, qidx_ref, scale_ref, offset_ref, feat_ref,
                         out_ref, *, nbits):
    """
    tgt_ref   : (Tn, 4)  f32  [b, x, y, z] target points
    qidx_ref  : (4, Mp)  f32  raw voxel indices, lane-dense over voxels
                              (padded lanes carry a sentinel batch id)
    scale_ref : (4, 1)   f32  per-row decode scale  (batch row = 1)
    offset_ref: (4, 1)   f32  per-row decode offset (batch row = 0)
    feat_ref  : (Mp, Cp) bf16 voxel features (zero padded, lane-dense C)
    out_ref   : (Tn, Cp) f32  interpolated features
    """
    tgt = tgt_ref[...]                                              # (Tn, 4)
    # Fused voxel-index -> voxel-center decode.
    q = qidx_ref[...] * scale_ref[...] + offset_ref[...]            # (4, Mp)
    tn, mp = tgt.shape[0], q.shape[1]

    # Squared distance via the MXU:  ||t||^2 + ||q||^2 - 2 * (t . q).
    row_is_batch = jax.lax.broadcasted_iota(jnp.int32, (4, mp), 0) == 0
    q_xyz = jnp.where(row_is_batch, 0.0, q)                         # batch row zeroed
    cross = jnp.dot(tgt, q_xyz, preferred_element_type=jnp.float32)  # (Tn, Mp)
    t_xyz = tgt[:, 1:4]
    t_sq = jnp.sum(t_xyz * t_xyz, axis=1, keepdims=True)            # (Tn, 1)
    q_sq = jnp.sum(q_xyz * q_xyz, axis=0, keepdims=True)            # (1, Mp)
    d2 = t_sq + q_sq - 2.0 * cross
    # Batch restriction + clamp (the MXU formula can round to ~-1e-7 at exact
    # coincidence, and the packed-argmin trick needs d2 >= 0).
    # TODO(synk): assumes the CUDA three_nn restricts neighbours to the same
    #             batch id and returns Euclidean (sqrt) distances (pointnet2).
    same_batch = tgt[:, 0:1] == q[0:1, :]
    d2 = jnp.where(same_batch, jnp.maximum(d2, 0.0), _BIG)

    # Pack the column index into the low mantissa bits so each NN pass needs a
    # single cross-lane reduction (value and argmin together). d2 >= 0, so
    # float ordering == bit ordering; index bits only break exact ties
    # (-> first argmin, matching the reference tie-break).
    idx_mask = (1 << nbits) - 1
    keep_mask = jnp.int32(-(1 << nbits))
    col = jax.lax.broadcasted_iota(jnp.int32, (1, mp), 1)
    packed = pltpu.bitcast(
        (pltpu.bitcast(d2, jnp.int32) & keep_mask) | col, jnp.float32)

    w_acc = jnp.zeros((tn, mp), jnp.float32)        # un-normalized weight matrix
    norm = jnp.zeros((tn, 1), jnp.float32)
    for _ in range(3):                              # three_nn: 3 nearest
        pmin = jnp.min(packed, axis=1, keepdims=True)               # (Tn, 1)
        pbits = pltpu.bitcast(pmin, jnp.int32)
        sel = pbits & idx_mask                                      # argmin column
        dmin = pltpu.bitcast(pbits & keep_mask, jnp.float32)        # its d^2
        recip = 1.0 / (jnp.sqrt(dmin) + 1e-8)                       # 1/(dist + eps)
        onehot = col == sel                                         # (Tn, Mp)
        w_acc = w_acc + jnp.where(onehot, recip, 0.0)
        norm = norm + recip
        packed = jnp.where(onehot, _MASKED, packed)                 # drop picked col

    # Gather-free interpolation: one bf16 MXU matmul; normalize after the matmul.
    out = jnp.dot(w_acc.astype(jnp.bfloat16), feat_ref[...],
                  preferred_element_type=jnp.float32)
    out_ref[...] = out * (1.0 / norm)


def three_nn_interpolate(target_points, query_indices, query_feats, scale,
                         offset, *, max_target_tile=256):
    """target_points: (N,4) bxyz; query_indices: (M,4) int; query_feats: (M,C)."""
    n = int(target_points.shape[0])
    m, c = int(query_feats.shape[0]), int(query_feats.shape[1])
    mp = _round_up(m, _LANE)
    cp = _round_up(c, _LANE)                        # lane-dense output / feature slab

    # Lane-dense (4, Mp) raw index slab; padded lanes get a sentinel batch id.
    q_t = jnp.pad(jnp.transpose(query_indices.astype(jnp.float32)),
                  ((0, 0), (0, mp - m)))
    if mp > m:
        valid = jnp.arange(mp) < m
        q_t = q_t.at[0].set(jnp.where(valid, q_t[0], jnp.float32(_PAD_BATCH)))
    scale2 = jnp.asarray(scale, jnp.float32).reshape(4, 1)
    offset2 = jnp.asarray(offset, jnp.float32).reshape(4, 1)
    # bf16 feature slab: MXU-native on v5e/v6e/v7x and halves VMEM residency.
    feats_p = jnp.pad(query_feats.astype(jnp.bfloat16), ((0, mp - m), (0, cp - c)))

    # ---- per-generation VMEM sizing (v5e/v6e: 128 MiB, v7x: 64 MiB) --------
    cap = _vmem_capacity_bytes()
    vmem_limit = int(min(cap * 0.85, cap - (8 << 20)))
    fixed = mp * cp * 2 + 4 * mp * 4 + (64 << 10)       # feat + q slabs (1 copy)
    row_bytes = 7 * 4 * mp + 3 * 4 * cp + 64            # live (Tn,Mp)/(Tn,Cp) temps
    avail = max(vmem_limit - fixed - (4 << 20), 8 * row_bytes)
    budget_rows = avail // row_bytes

    tn = int(min(max_target_tile, budget_rows, _round_up(n, 8)))
    if tn >= 128:
        tn = (tn // 128) * 128        # MXU-aligned (128 on v5e, fills 256 tiles too)
    else:
        tn = max(8, (tn // 8) * 8)
    np_ = _round_up(n, tn)
    tgt = jnp.pad(target_points.astype(jnp.float32), ((0, np_ - n), (0, 0)))

    nbits = max(1, (mp - 1).bit_length())
    kernel = functools.partial(_three_interp_kernel, nbits=nbits)

    def build_specs(resident):
        tgt_spec = pl.BlockSpec((tn, 4), lambda i: (i, 0))
        sc_spec = pl.BlockSpec((4, 1), lambda i: (0, 0))
        if resident:
            # Grid-invariant slabs: whole-array VMEM residency, single copy
            # (no double buffer for data that never changes across the grid).
            slab = pl.BlockSpec(memory_space=pltpu.MemorySpace.VMEM)
            return [tgt_spec, slab, sc_spec, sc_spec, slab]
        return [tgt_spec,
                pl.BlockSpec((4, mp), lambda i: (0, 0)),
                sc_spec, sc_spec,
                pl.BlockSpec((mp, cp), lambda i: (0, 0))]

    out, last_err = None, None
    for resident in (True, False):       # fallback: pipelined blocked slabs
        try:
            out = pl.pallas_call(
                kernel,
                out_shape=jax.ShapeDtypeStruct((np_, cp), jnp.float32),
                grid=(np_ // tn,),
                in_specs=build_specs(resident),
                out_specs=pl.BlockSpec((tn, cp), lambda i: (i, 0)),
                compiler_params=pltpu.CompilerParams(
                    dimension_semantics=("parallel",),
                    vmem_limit_bytes=vmem_limit),
            )(tgt, q_t, scale2, offset2, feats_p)
            out = jax.block_until_ready(out)
            break
        except Exception as e:           # pragma: no cover
            last_err = e
            out = None
    if out is None:
        raise last_err
    return out[:n, :c]


# ----------------------------------------------------------------------------
# Module
# ----------------------------------------------------------------------------
class SparseTensor(NamedTuple):
    features: jnp.ndarray        # (M, C) f32
    indices: jnp.ndarray         # (M, 4) int32  [b, x, y, z]
    spatial_shape: np.ndarray
    batch_size: int


class Voxel2Point:
    """Pallas TPU port of SS_Conv's Voxel2Point."""

    def __init__(self, voxel_extent=None, unit_voxel_extent=None):
        assert voxel_extent is not None or unit_voxel_extent is not None
        self.voxel_extent = (np.asarray(voxel_extent, np.float64)
                             if voxel_extent is not None else None)
        self.unit_voxel_extent = (np.asarray(unit_voxel_extent, np.float64)
                                  if unit_voxel_extent is not None else None)

    def _decode_affine(self, spatial_shape):
        spatial_shape = np.asarray(spatial_shape, np.float64)
        if self.voxel_extent is not None:
            unit = self.voxel_extent / spatial_shape
            extent = self.voxel_extent
        else:
            unit = self.unit_voxel_extent
            extent = self.unit_voxel_extent * spatial_shape
        scale = np.concatenate([[1.0], unit]).astype(np.float32)
        offset = np.concatenate(
            [[0.0], -0.5 * extent + 0.5 * unit]).astype(np.float32)
        return scale, offset

    def __call__(self, sparse_feat, point_cloud=None, batch_ids=None):
        scale, offset = self._decode_affine(sparse_feat.spatial_shape)
        if point_cloud is not None:
            assert batch_ids is not None
            points = jnp.concatenate(
                [batch_ids.astype(jnp.float32).reshape(-1, 1),
                 point_cloud.astype(jnp.float32)], axis=1)
            # Fused path: voxel-index decode happens inside the interp kernel.
            return three_nn_interpolate(points, sparse_feat.indices,
                                        sparse_feat.features, scale, offset)
        vx_points, vx_feats = self._get_vertice_feats(sparse_feat, scale, offset)
        return vx_points[:, 1:], vx_feats, vx_points[:, 0]

    def _get_vertice_feats(self, sparse_tensor, scale=None, offset=None):
        if scale is None or offset is None:
            scale, offset = self._decode_affine(sparse_tensor.spatial_shape)
        vx_points = voxel_indices_to_points(sparse_tensor.indices, scale, offset)
        return vx_points, sparse_tensor.features


# ----------------------------------------------------------------------------
if __name__ == "__main__":
    key = jax.random.PRNGKey(0)
    k1, k2, k3, k4, k5 = jax.random.split(key, 5)

    D, C = 16, 8                # spatial voxel grid 16^3, 8 feature channels
    M = 24                      # occupied voxels
    N = 40                      # target points to interpolate onto
    unit = (0.1, 0.1, 0.1)      # -> voxel extent 1.6, half extent 0.8

    batch_v = jax.random.randint(k1, (M, 1), 0, 2)
    xyz_v = jax.random.randint(k2, (M, 3), 0, D)
    indices = jnp.concatenate([batch_v, xyz_v], axis=1).astype(jnp.int32)
    features = jax.random.normal(k3, (M, C), dtype=jnp.float32)
    st = SparseTensor(features=features, indices=indices,
                      spatial_shape=np.array([D, D, D], np.int64), batch_size=2)

    point_cloud = jax.random.uniform(k4, (N, 3), jnp.float32,
                                     minval=-0.79, maxval=0.79)
    batch_ids = jax.random.randint(k5, (N,), 0, 2).astype(jnp.int32)

    v2p = Voxel2Point(unit_voxel_extent=unit)

    # Branch 1: interpolate voxel features onto the point cloud (three_nn path)
    point_feats = v2p(st, point_cloud=point_cloud, batch_ids=batch_ids)

    # Branch 2: decode voxel centers directly (no point cloud given)
    vx_pc, vx_feats, vx_bids = v2p(st)

    jax.block_until_ready((point_feats, vx_pc, vx_feats, vx_bids))
    assert point_feats.shape == (N, C)
    assert vx_pc.shape == (M, 3) and vx_feats.shape == (M, C) and vx_bids.shape == (M,)
    assert bool(jnp.all(jnp.isfinite(point_feats)))
    print("KERNEL_OK")
</pallas_src>

<mosaic_0001>
module attributes {stable_mosaic.version = 11 : i64} {
  func.func @_three_interp_kernel(%arg0: i32, %arg1: memref<40x4xf32, #tpu.memory_space<vmem>>, %arg2: memref<4x128xf32, #tpu.memory_space<vmem>>, %arg3: memref<4x1xf32, #tpu.memory_space<vmem>>, %arg4: memref<4x1xf32, #tpu.memory_space<vmem>>, %arg5: memref<128x128xbf16, #tpu.memory_space<vmem>>, %arg6: memref<40x128xf32, #tpu.memory_space<vmem>>) attributes {dimension_semantics = [#tpu.dimension_semantics<parallel>], iteration_bounds = array<i64: 1>, scalar_prefetch = 0 : i64, scratch_operands = 0 : i64, tpu.core_type = #tpu.core_type<tc>, window_params = [{transform_indices = @transform_0, window_bounds = array<i64: 40, 4>}, {pipeline_mode = #tpu.pipeline_mode<synchronous>, transform_indices = @transform_1, window_bounds = array<i64: 4, 128>}, {pipeline_mode = #tpu.pipeline_mode<synchronous>, transform_indices = @transform_2, window_bounds = array<i64: 4, 1>}, {pipeline_mode = #tpu.pipeline_mode<synchronous>, transform_indices = @transform_3, window_bounds = array<i64: 4, 1>}, {pipeline_mode = #tpu.pipeline_mode<synchronous>, transform_indices = @transform_4, window_bounds = array<i64: 128, 128>}, {transform_indices = @transform_5, window_bounds = array<i64: 40, 128>}]} {
    %c0 = arith.constant 0 : index
    %c0_0 = arith.constant 0 : index
    %0 = vector.load %arg1[%c0, %c0_0] : memref<40x4xf32, #tpu.memory_space<vmem>>, vector<40x4xf32>
    %c0_1 = arith.constant 0 : index
    %c0_2 = arith.constant 0 : index
    %1 = vector.load %arg2[%c0_1, %c0_2] : memref<4x128xf32, #tpu.memory_space<vmem>>, vector<4x128xf32>
    %c0_3 = arith.constant 0 : index
    %c0_4 = arith.constant 0 : index
    %2 = vector.load %arg3[%c0_3, %c0_4] : memref<4x1xf32, #tpu.memory_space<vmem>>, vector<4x1xf32>
    %3 = vector.broadcast %2 : vector<4x1xf32> to vector<4x128xf32>
    %4 = arith.mulf %1, %3 : vector<4x128xf32>
    %c0_5 = arith.constant 0 : index
    %c0_6 = arith.constant 0 : index
    %5 = vector.load %arg4[%c0_5, %c0_6] : memref<4x1xf32, #tpu.memory_space<vmem>>, vector<4x1xf32>
    %6 = vector.broadcast %5 : vector<4x1xf32> to vector<4x128xf32>
    %7 = arith.addf %4, %6 : vector<4x128xf32>
    %8 = tpu.iota {dimensions = array<i32: 0>} : vector<4x128xi32>
    %c0_i32 = arith.constant 0 : i32
    %9 = vector.broadcast %c0_i32 : i32 to vector<4x128xi32>
    %10 = arith.cmpi eq, %8, %9 : vector<4x128xi32>
    %cst = arith.constant 0.000000e+00 : f32
    %11 = vector.broadcast %cst : f32 to vector<4x128xf32>
    %12 = arith.select %10, %11, %7 : vector<4x128xi1>, vector<4x128xf32>
    %cst_7 = arith.constant dense<0.000000e+00> : vector<40x128xf32>
    %13 = tpu.matmul %0, %12, %cst_7 {dimension_numbers = #tpu.dot_dimension_numbers<[1], [0], [0], [1], [0, 0, 1, 1], [], []>} : vector<40x4xf32>, vector<4x128xf32>, vector<40x128xf32> -> vector<40x128xf32>
    %14 = vector.extract_strided_slice %0 {offsets = [0, 1], sizes = [40, 3], strides = [1, 1]} : vector<40x4xf32> to vector<40x3xf32>
    %15 = arith.mulf %14, %14 : vector<40x3xf32>
    %cst_8 = arith.constant dense<0.000000e+00> : vector<40xf32>
    %16 = vector.multi_reduction <add>, %15, %cst_8 [1] : vector<40x3xf32> to vector<40xf32>
    %17 = vector.shape_cast %16 : vector<40xf32> to vector<40x1xf32>
    %18 = arith.mulf %12, %12 : vector<4x128xf32>
    %cst_9 = arith.constant dense<0.000000e+00> : vector<128xf32>
    %19 = vector.multi_reduction <add>, %18, %cst_9 [0] : vector<4x128xf32> to vector<128xf32>
    %20 = vector.shape_cast %19 : vector<128xf32> to vector<1x128xf32>
    %21 = vector.broadcast %17 : vector<40x1xf32> to vector<40x128xf32>
    %22 = vector.broadcast %20 : vector<1x128xf32> to vector<40x128xf32>
    %23 = arith.addf %21, %22 : vector<40x128xf32>
    %cst_10 = arith.constant 2.000000e+00 : f32
    %24 = vector.broadcast %cst_10 : f32 to vector<40x128xf32>
    %25 = arith.mulf %24, %13 : vector<40x128xf32>
    %26 = arith.subf %23, %25 : vector<40x128xf32>
    %27 = vector.extract_strided_slice %0 {offsets = [0, 0], sizes = [40, 1], strides = [1, 1]} : vector<40x4xf32> to vector<40x1xf32>
    %28 = vector.extract_strided_slice %7 {offsets = [0, 0], sizes = [1, 128], strides = [1, 1]} : vector<4x128xf32> to vector<1x128xf32>
    %29 = vector.broadcast %27 : vector<40x1xf32> to vector<40x128xf32>
    %30 = vector.broadcast %28 : vector<1x128xf32> to vector<40x128xf32>
    %31 = arith.cmpf oeq, %29, %30 : vector<40x128xf32>
    %cst_11 = arith.constant 0.000000e+00 : f32
    %32 = vector.broadcast %cst_11 : f32 to vector<40x128xf32>
    %33 = arith.maximumf %26, %32 : vector<40x128xf32>
    %cst_12 = arith.constant 1.000000e+30 : f32
    %34 = vector.broadcast %cst_12 : f32 to vector<40x128xf32>
    %35 = arith.select %31, %33, %34 : vector<40x128xi1>, vector<40x128xf32>
    %36 = tpu.iota {dimensions = array<i32: 1>} : vector<1x128xi32>
    %37 = tpu.bitcast %35 : vector<40x128xf32> -> vector<40x128xi32>
    %c-128_i32 = arith.constant -128 : i32
    %38 = vector.broadcast %c-128_i32 : i32 to vector<40x128xi32>
    %39 = arith.andi %37, %38 : vector<40x128xi32>
    %40 = vector.broadcast %36 : vector<1x128xi32> to vector<40x128xi32>
    %41 = arith.ori %39, %40 : vector<40x128xi32>
    %42 = tpu.bitcast %41 : vector<40x128xi32> -> vector<40x128xf32>
    %cst_13 = arith.constant 0.000000e+00 : f32
    %43 = vector.broadcast %cst_13 : f32 to vector<40x128xf32>
    %cst_14 = arith.constant 0.000000e+00 : f32
    %44 = vector.broadcast %cst_14 : f32 to vector<40x1xf32>
    %cst_15 = arith.constant dense<0x7F800000> : vector<40xf32>
    %45 = vector.multi_reduction <minimumf>, %42, %cst_15 [1] : vector<40x128xf32> to vector<40xf32>
    %46 = vector.shape_cast %45 : vector<40xf32> to vector<40x1xf32>
    %47 = tpu.bitcast %46 : vector<40x1xf32> -> vector<40x1xi32>
    %c127_i32 = arith.constant 127 : i32
    %48 = vector.broadcast %c127_i32 : i32 to vector<40x1xi32>
    %49 = arith.andi %47, %48 : vector<40x1xi32>
    %c-128_i32_16 = arith.constant -128 : i32
    %50 = vector.broadcast %c-128_i32_16 : i32 to vector<40x1xi32>
    %51 = arith.andi %47, %50 : vector<40x1xi32>
    %52 = tpu.bitcast %51 : vector<40x1xi32> -> vector<40x1xf32>
    %53 = math.sqrt %52 : vector<40x1xf32>
    %cst_17 = arith.constant 9.99999993E-9 : f32
    %54 = vector.broadcast %cst_17 : f32 to vector<40x1xf32>
    %55 = arith.addf %53, %54 : vector<40x1xf32>
    %cst_18 = arith.constant 1.000000e+00 : f32
    %56 = vector.broadcast %cst_18 : f32 to vector<40x1xf32>
    %57 = arith.divf %56, %55 : vector<40x1xf32>
    %58 = vector.broadcast %36 : vector<1x128xi32> to vector<40x128xi32>
    %59 = vector.broadcast %49 : vector<40x1xi32> to vector<40x128xi32>
    %60 = arith.cmpi eq, %58, %59 : vector<40x128xi32>
    %cst_19 = arith.constant 0.000000e+00 : f32
    %61 = vector.shape_cast %57 : vector<40x1xf32> to vector<40x1xf32>
    %62 = vector.broadcast %61 : vector<40x1xf32> to vector<40x128xf32>
    %63 = vector.broadcast %cst_19 : f32 to vector<40x128xf32>
    %64 = arith.select %60, %62, %63 : vector<40x128xi1>, vector<40x128xf32>
    %65 = arith.addf %43, %64 : vector<40x128xf32>
    %66 = arith.addf %44, %57 : vector<40x1xf32>
    %cst_20 = arith.constant 2.000000e+30 : f32
    %67 = vector.broadcast %cst_20 : f32 to vector<40x128xf32>
    %68 = arith.select %60, %67, %42 : vector<40x128xi1>, vector<40x128xf32>
    %cst_21 = arith.constant dense<0x7F800000> : vector<40xf32>
    %69 = vector.multi_reduction <minimumf>, %68, %cst_21 [1] : vector<40x128xf32> to vector<40xf32>
    %70 = vector.shape_cast %69 : vector<40xf32> to vector<40x1xf32>
    %71 = tpu.bitcast %70 : vector<40x1xf32> -> vector<40x1xi32>
    %c127_i32_22 = arith.constant 127 : i32
    %72 = vector.broadcast %c127_i32_22 : i32 to vector<40x1xi32>
    %73 = arith.andi %71, %72 : vector<40x1xi32>
    %c-128_i32_23 = arith.constant -128 : i32
    %74 = vector.broadcast %c-128_i32_23 : i32 to vector<40x1xi32>
    %75 = arith.andi %71, %74 : vector<40x1xi32>
    %76 = tpu.bitcast %75 : vector<40x1xi32> -> vector<40x1xf32>
    %77 = math.sqrt %76 : vector<40x1xf32>
    %cst_24 = arith.constant 9.99999993E-9 : f32
    %78 = vector.broadcast %cst_24 : f32 to vector<40x1xf32>
    %79 = arith.addf %77, %78 : vector<40x1xf32>
    %cst_25 = arith.constant 1.000000e+00 : f32
    %80 = vector.broadcast %cst_25 : f32 to vector<40x1xf32>
    %81 = arith.divf %80, %79 : vector<40x1xf32>
    %82 = vector.broadcast %36 : vector<1x128xi32> to vector<40x128xi32>
    %83 = vector.broadcast %73 : vector<40x1xi32> to vector<40x128xi32>
    %84 = arith.cmpi eq, %82, %83 : vector<40x128xi32>
    %cst_26 = arith.constant 0.000000e+00 : f32
    %85 = vector.shape_cast %81 : vector<40x1xf32> to vector<40x1xf32>
    %86 = vector.broadcast %85 : vector<40x1xf32> to vector<40x128xf32>
    %87 = vector.broadcast %cst_26 : f32 to vector<40x128xf32>
    %88 = arith.select %84, %86, %87 : vector<40x128xi1>, vector<40x128xf32>
    %89 = arith.addf %65, %88 : vector<40x128xf32>
    %90 = arith.addf %66, %81 : vector<40x1xf32>
    %cst_27 = arith.constant 2.000000e+30 : f32
    %91 = vector.broadcast %cst_27 : f32 to vector<40x128xf32>
    %92 = arith.select %84, %91, %68 : vector<40x128xi1>, vector<40x128xf32>
    %cst_28 = arith.constant dense<0x7F800000> : vector<40xf32>
    %93 = vector.multi_reduction <minimumf>, %92, %cst_28 [1] : vector<40x128xf32> to vector<40xf32>
    %94 = vector.shape_cast %93 : vector<40xf32> to vector<40x1xf32>
    %95 = tpu.bitcast %94 : vector<40x1xf32> -> vector<40x1xi32>
    %c127_i32_29 = arith.constant 127 : i32
    %96 = vector.broadcast %c127_i32_29 : i32 to vector<40x1xi32>
    %97 = arith.andi %95, %96 : vector<40x1xi32>
    %c-128_i32_30 = arith.constant -128 : i32
    %98 = vector.broadcast %c-128_i32_30 : i32 to vector<40x1xi32>
    %99 = arith.andi %95, %98 : vector<40x1xi32>
    %100 = tpu.bitcast %99 : vector<40x1xi32> -> vector<40x1xf32>
    %101 = math.sqrt %100 : vector<40x1xf32>
    %cst_31 = arith.constant 9.99999993E-9 : f32
    %102 = vector.broadcast %cst_31 : f32 to vector<40x1xf32>
    %103 = arith.addf %101, %102 : vector<40x1xf32>
    %cst_32 = arith.constant 1.000000e+00 : f32
    %104 = vector.broadcast %cst_32 : f32 to vector<40x1xf32>
    %105 = arith.divf %104, %103 : vector<40x1xf32>
    %106 = vector.broadcast %36 : vector<1x128xi32> to vector<40x128xi32>
    %107 = vector.broadcast %97 : vector<40x1xi32> to vector<40x128xi32>
    %108 = arith.cmpi eq, %106, %107 : vector<40x128xi32>
    %cst_33 = arith.constant 0.000000e+00 : f32
    %109 = vector.shape_cast %105 : vector<40x1xf32> to vector<40x1xf32>
    %110 = vector.broadcast %109 : vector<40x1xf32> to vector<40x128xf32>
    %111 = vector.broadcast %cst_33 : f32 to vector<40x128xf32>
    %112 = arith.select %108, %110, %111 : vector<40x128xi1>, vector<40x128xf32>
    %113 = arith.addf %89, %112 : vector<40x128xf32>
    %114 = arith.addf %90, %105 : vector<40x1xf32>
    %115 = arith.truncf %113 : vector<40x128xf32> to vector<40x128xbf16>
    %c0_34 = arith.constant 0 : index
    %c0_35 = arith.constant 0 : index
    %116 = vector.load %arg5[%c0_34, %c0_35] : memref<128x128xbf16, #tpu.memory_space<vmem>>, vector<128x128xbf16>
    %cst_36 = arith.constant dense<0.000000e+00> : vector<40x128xf32>
    %117 = tpu.matmul %115, %116, %cst_36 {dimension_numbers = #tpu.dot_dimension_numbers<[1], [0], [0], [1], [0, 0, 1, 1], [], []>} : vector<40x128xbf16>, vector<128x128xbf16>, vector<40x128xf32> -> vector<40x128xf32>
    %cst_37 = arith.constant 1.000000e+00 : f32
    %118 = vector.broadcast %cst_37 : f32 to vector<40x1xf32>
    %119 = arith.divf %118, %114 : vector<40x1xf32>
    %120 = vector.broadcast %119 : vector<40x1xf32> to vector<40x128xf32>
    %121 = arith.mulf %117, %120 : vector<40x128xf32>
    %c0_38 = arith.constant 0 : index
    %c0_39 = arith.constant 0 : index
    %122 = vector.load %arg6[%c0_38, %c0_39] : memref<40x128xf32, #tpu.memory_space<vmem>>, vector<40x128xf32>
    tpu.vector_store %arg6[%c0_38, %c0_39], %121 {strides = array<i32>} : memref<40x128xf32, #tpu.memory_space<vmem>>, vector<40x128xf32>,
    return
  }
  func.func @transform_0(%arg0: i32) -> (i32, i32) {
    %c0_i32 = arith.constant 0 : i32
    %c0_i32_0 = arith.constant 0 : i32
    return %arg0, %c0_i32 : i32, i32
  }
  func.func @transform_1(%arg0: i32) -> (i32, i32) {
    %c0_i32 = arith.constant 0 : i32
    %c0_i32_0 = arith.constant 0 : i32
    %c0_i32_1 = arith.constant 0 : i32
    return %c0_i32, %c0_i32_0 : i32, i32
  }
  func.func @transform_2(%arg0: i32) -> (i32, i32) {
    %c0_i32 = arith.constant 0 : i32
    %c0_i32_0 = arith.constant 0 : i32
    %c0_i32_1 = arith.constant 0 : i32
    return %c0_i32, %c0_i32_0 : i32, i32
  }
  func.func @transform_3(%arg0: i32) -> (i32, i32) {
    %c0_i32 = arith.constant 0 : i32
    %c0_i32_0 = arith.constant 0 : i32
    %c0_i32_1 = arith.constant 0 : i32
    return %c0_i32, %c0_i32_0 : i32, i32
  }
  func.func @transform_4(%arg0: i32) -> (i32, i32) {
    %c0_i32 = arith.constant 0 : i32
    %c0_i32_0 = arith.constant 0 : i32
    %c0_i32_1 = arith.constant 0 : i32
    return %c0_i32, %c0_i32_0 : i32, i32
  }
  func.func @transform_5(%arg0: i32) -> (i32, i32) {
    %c0_i32 = arith.constant 0 : i32
    %c0_i32_0 = arith.constant 0 : i32
    return %arg0, %c0_i32 : i32, i32
  }
}

module attributes {stable_mosaic.version = 11 : i64} {
  func.func @_three_interp_kernel(%arg0: i32, %arg1: memref<40x4xf32, #tpu.memory_space<vmem>>, %arg2: memref<4x128xf32, #tpu.memory_space<vmem>>, %arg3: memref<4x1xf32, #tpu.memory_space<vmem>>, %arg4: memref<4x1xf32, #tpu.memory_space<vmem>>, %arg5: memref<128x128xbf16, #tpu.memory_space<vmem>>, %arg6: memref<40x128xf32, #tpu.memory_space<vmem>>) attributes {dimension_semantics = [#tpu.dimension_semantics<parallel>], iteration_bounds = array<i64: 1>, scalar_prefetch = 0 : i64, scratch_operands = 0 : i64, tpu.core_type = #tpu.core_type<tc>, window_params = [{transform_indices = @transform_0, window_bounds = array<i64: 40, 4>}, {pipeline_mode = #tpu.pipeline_mode<synchronous>, transform_indices = @transform_1, window_bounds = array<i64: 4, 128>}, {pipeline_mode = #tpu.pipeline_mode<synchronous>, transform_indices = @transform_2, window_bounds = array<i64: 4, 1>}, {pipeline_mode = #tpu.pipeline_mode<synchronous>, transform_indices = @transform_3, window_bounds = array<i64: 4, 1>}, {pipeline_mode = #tpu.pipeline_mode<synchronous>, transform_indices = @transform_4, window_bounds = array<i64: 128, 128>}, {transform_indices = @transform_5, window_bounds = array<i64: 40, 128>}]} {
    %c0 = arith.constant 0 : index
    %c0_0 = arith.constant 0 : index
    %0 = vector.load %arg1[%c0, %c0_0] : memref<40x4xf32, #tpu.memory_space<vmem>>, vector<40x4xf32>
    %c0_1 = arith.constant 0 : index
    %c0_2 = arith.constant 0 : index
    %1 = vector.load %arg2[%c0_1, %c0_2] : memref<4x128xf32, #tpu.memory_space<vmem>>, vector<4x128xf32>
    %c0_3 = arith.constant 0 : index
    %c0_4 = arith.constant 0 : index
    %2 = vector.load %arg3[%c0_3, %c0_4] : memref<4x1xf32, #tpu.memory_space<vmem>>, vector<4x1xf32>
    %3 = vector.broadcast %2 : vector<4x1xf32> to vector<4x128xf32>
    %4 = arith.mulf %1, %3 : vector<4x128xf32>
    %c0_5 = arith.constant 0 : index
    %c0_6 = arith.constant 0 : index
    %5 = vector.load %arg4[%c0_5, %c0_6] : memref<4x1xf32, #tpu.memory_space<vmem>>, vector<4x1xf32>
    %6 = vector.broadcast %5 : vector<4x1xf32> to vector<4x128xf32>
    %7 = arith.addf %4, %6 : vector<4x128xf32>
    %8 = tpu.iota {dimensions = array<i32: 0>} : vector<4x128xi32>
    %c0_i32 = arith.constant 0 : i32
    %9 = vector.broadcast %c0_i32 : i32 to vector<4x128xi32>
    %10 = arith.cmpi eq, %8, %9 : vector<4x128xi32>
    %cst = arith.constant 0.000000e+00 : f32
    %11 = vector.broadcast %cst : f32 to vector<4x128xf32>
    %12 = arith.select %10, %11, %7 : vector<4x128xi1>, vector<4x128xf32>
    %cst_7 = arith.constant dense<0.000000e+00> : vector<40x128xf32>
    %13 = tpu.matmul %0, %12, %cst_7 {dimension_numbers = #tpu.dot_dimension_numbers<[1], [0], [0], [1], [0, 0, 1, 1], [], []>} : vector<40x4xf32>, vector<4x128xf32>, vector<40x128xf32> -> vector<40x128xf32>
    %14 = vector.extract_strided_slice %0 {offsets = [0, 1], sizes = [40, 3], strides = [1, 1]} : vector<40x4xf32> to vector<40x3xf32>
    %15 = arith.mulf %14, %14 : vector<40x3xf32>
    %cst_8 = arith.constant dense<0.000000e+00> : vector<40xf32>
    %16 = vector.multi_reduction <add>, %15, %cst_8 [1] : vector<40x3xf32> to vector<40xf32>
    %17 = vector.shape_cast %16 : vector<40xf32> to vector<40x1xf32>
    %18 = arith.mulf %12, %12 : vector<4x128xf32>
    %cst_9 = arith.constant dense<0.000000e+00> : vector<128xf32>
    %19 = vector.multi_reduction <add>, %18, %cst_9 [0] : vector<4x128xf32> to vector<128xf32>
    %20 = vector.shape_cast %19 : vector<128xf32> to vector<1x128xf32>
    %21 = vector.broadcast %17 : vector<40x1xf32> to vector<40x128xf32>
    %22 = vector.broadcast %20 : vector<1x128xf32> to vector<40x128xf32>
    %23 = arith.addf %21, %22 : vector<40x128xf32>
    %cst_10 = arith.constant 2.000000e+00 : f32
    %24 = vector.broadcast %cst_10 : f32 to vector<40x128xf32>
    %25 = arith.mulf %24, %13 : vector<40x128xf32>
    %26 = arith.subf %23, %25 : vector<40x128xf32>
    %27 = vector.extract_strided_slice %0 {offsets = [0, 0], sizes = [40, 1], strides = [1, 1]} : vector<40x4xf32> to vector<40x1xf32>
    %28 = vector.extract_strided_slice %7 {offsets = [0, 0], sizes = [1, 128], strides = [1, 1]} : vector<4x128xf32> to vector<1x128xf32>
    %29 = vector.broadcast %27 : vector<40x1xf32> to vector<40x128xf32>
    %30 = vector.broadcast %28 : vector<1x128xf32> to vector<40x128xf32>
    %31 = arith.cmpf oeq, %29, %30 : vector<40x128xf32>
    %cst_11 = arith.constant 0.000000e+00 : f32
    %32 = vector.broadcast %cst_11 : f32 to vector<40x128xf32>
    %33 = arith.maximumf %26, %32 : vector<40x128xf32>
    %cst_12 = arith.constant 1.000000e+30 : f32
    %34 = vector.broadcast %cst_12 : f32 to vector<40x128xf32>
    %35 = arith.select %31, %33, %34 : vector<40x128xi1>, vector<40x128xf32>
    %36 = tpu.iota {dimensions = array<i32: 1>} : vector<1x128xi32>
    %37 = tpu.bitcast %35 : vector<40x128xf32> -> vector<40x128xi32>
    %c-128_i32 = arith.constant -128 : i32
    %38 = vector.broadcast %c-128_i32 : i32 to vector<40x128xi32>
    %39 = arith.andi %37, %38 : vector<40x128xi32>
    %40 = vector.broadcast %36 : vector<1x128xi32> to vector<40x128xi32>
    %41 = arith.ori %39, %40 : vector<40x128xi32>
    %42 = tpu.bitcast %41 : vector<40x128xi32> -> vector<40x128xf32>
    %cst_13 = arith.constant 0.000000e+00 : f32
    %43 = vector.broadcast %cst_13 : f32 to vector<40x128xf32>
    %cst_14 = arith.constant 0.000000e+00 : f32
    %44 = vector.broadcast %cst_14 : f32 to vector<40x1xf32>
    %cst_15 = arith.constant dense<0x7F800000> : vector<40xf32>
    %45 = vector.multi_reduction <minimumf>, %42, %cst_15 [1] : vector<40x128xf32> to vector<40xf32>
    %46 = vector.shape_cast %45 : vector<40xf32> to vector<40x1xf32>
    %47 = tpu.bitcast %46 : vector<40x1xf32> -> vector<40x1xi32>
    %c127_i32 = arith.constant 127 : i32
    %48 = vector.broadcast %c127_i32 : i32 to vector<40x1xi32>
    %49 = arith.andi %47, %48 : vector<40x1xi32>
    %c-128_i32_16 = arith.constant -128 : i32
    %50 = vector.broadcast %c-128_i32_16 : i32 to vector<40x1xi32>
    %51 = arith.andi %47, %50 : vector<40x1xi32>
    %52 = tpu.bitcast %51 : vector<40x1xi32> -> vector<40x1xf32>
    %53 = math.sqrt %52 : vector<40x1xf32>
    %cst_17 = arith.constant 9.99999993E-9 : f32
    %54 = vector.broadcast %cst_17 : f32 to vector<40x1xf32>
    %55 = arith.addf %53, %54 : vector<40x1xf32>
    %cst_18 = arith.constant 1.000000e+00 : f32
    %56 = vector.broadcast %cst_18 : f32 to vector<40x1xf32>
    %57 = arith.divf %56, %55 : vector<40x1xf32>
    %58 = vector.broadcast %36 : vector<1x128xi32> to vector<40x128xi32>
    %59 = vector.broadcast %49 : vector<40x1xi32> to vector<40x128xi32>
    %60 = arith.cmpi eq, %58, %59 : vector<40x128xi32>
    %cst_19 = arith.constant 0.000000e+00 : f32
    %61 = vector.shape_cast %57 : vector<40x1xf32> to vector<40x1xf32>
    %62 = vector.broadcast %61 : vector<40x1xf32> to vector<40x128xf32>
    %63 = vector.broadcast %cst_19 : f32 to vector<40x128xf32>
    %64 = arith.select %60, %62, %63 : vector<40x128xi1>, vector<40x128xf32>
    %65 = arith.addf %43, %64 : vector<40x128xf32>
    %66 = arith.addf %44, %57 : vector<40x1xf32>
    %cst_20 = arith.constant 2.000000e+30 : f32
    %67 = vector.broadcast %cst_20 : f32 to vector<40x128xf32>
    %68 = arith.select %60, %67, %42 : vector<40x128xi1>, vector<40x128xf32>
    %cst_21 = arith.constant dense<0x7F800000> : vector<40xf32>
    %69 = vector.multi_reduction <minimumf>, %68, %cst_21 [1] : vector<40x128xf32> to vector<40xf32>
    %70 = vector.shape_cast %69 : vector<40xf32> to vector<40x1xf32>
    %71 = tpu.bitcast %70 : vector<40x1xf32> -> vector<40x1xi32>
    %c127_i32_22 = arith.constant 127 : i32
    %72 = vector.broadcast %c127_i32_22 : i32 to vector<40x1xi32>
    %73 = arith.andi %71, %72 : vector<40x1xi32>
    %c-128_i32_23 = arith.constant -128 : i32
    %74 = vector.broadcast %c-128_i32_23 : i32 to vector<40x1xi32>
    %75 = arith.andi %71, %74 : vector<40x1xi32>
    %76 = tpu.bitcast %75 : vector<40x1xi32> -> vector<40x1xf32>
    %77 = math.sqrt %76 : vector<40x1xf32>
    %cst_24 = arith.constant 9.99999993E-9 : f32
    %78 = vector.broadcast %cst_24 : f32 to vector<40x1xf32>
    %79 = arith.addf %77, %78 : vector<40x1xf32>
    %cst_25 = arith.constant 1.000000e+00 : f32
    %80 = vector.broadcast %cst_25 : f32 to vector<40x1xf32>
    %81 = arith.divf %80, %79 : vector<40x1xf32>
    %82 = vector.broadcast %36 : vector<1x128xi32> to vector<40x128xi32>
    %83 = vector.broadcast %73 : vector<40x1xi32> to vector<40x128xi32>
    %84 = arith.cmpi eq, %82, %83 : vector<40x128xi32>
    %cst_26 = arith.constant 0.000000e+00 : f32
    %85 = vector.shape_cast %81 : vector<40x1xf32> to vector<40x1xf32>
    %86 = vector.broadcast %85 : vector<40x1xf32> to vector<40x128xf32>
    %87 = vector.broadcast %cst_26 : f32 to vector<40x128xf32>
    %88 = arith.select %84, %86, %87 : vector<40x128xi1>, vector<40x128xf32>
    %89 = arith.addf %65, %88 : vector<40x128xf32>
    %90 = arith.addf %66, %81 : vector<40x1xf32>
    %cst_27 = arith.constant 2.000000e+30 : f32
    %91 = vector.broadcast %cst_27 : f32 to vector<40x128xf32>
    %92 = arith.select %84, %91, %68 : vector<40x128xi1>, vector<40x128xf32>
    %cst_28 = arith.constant dense<0x7F800000> : vector<40xf32>
    %93 = vector.multi_reduction <minimumf>, %92, %cst_28 [1] : vector<40x128xf32> to vector<40xf32>
    %94 = vector.shape_cast %93 : vector<40xf32> to vector<40x1xf32>
    %95 = tpu.bitcast %94 : vector<40x1xf32> -> vector<40x1xi32>
    %c127_i32_29 = arith.constant 127 : i32
    %96 = vector.broadcast %c127_i32_29 : i32 to vector<40x1xi32>
    %97 = arith.andi %95, %96 : vector<40x1xi32>
    %c-128_i32_30 = arith.constant -128 : i32
    %98 = vector.broadcast %c-128_i32_30 : i32 to vector<40x1xi32>
    %99 = arith.andi %95, %98 : vector<40x1xi32>
    %100 = tpu.bitcast %99 : vector<40x1xi32> -> vector<40x1xf32>
    %101 = math.sqrt %100 : vector<40x1xf32>
    %cst_31 = arith.constant 9.99999993E-9 : f32
    %102 = vector.broadcast %cst_31 : f32 to vector<40x1xf32>
    %103 = arith.addf %101, %102 : vector<40x1xf32>
    %cst_32 = arith.constant 1.000000e+00 : f32
    %104 = vector.broadcast %cst_32 : f32 to vector<40x1xf32>
    %105 = arith.divf %104, %103 : vector<40x1xf32>
    %106 = vector.broadcast %36 : vector<1x128xi32> to vector<40x128xi32>
    %107 = vector.broadcast %97 : vector<40x1xi32> to vector<40x128xi32>
    %108 = arith.cmpi eq, %106, %107 : vector<40x128xi32>
    %cst_33 = arith.constant 0.000000e+00 : f32
    %109 = vector.shape_cast %105 : vector<40x1xf32> to vector<40x1xf32>
    %110 = vector.broadcast %109 : vector<40x1xf32> to vector<40x128xf32>
    %111 = vector.broadcast %cst_33 : f32 to vector<40x128xf32>
    %112 = arith.select %108, %110, %111 : vector<40x128xi1>, vector<40x128xf32>
    %113 = arith.addf %89, %112 : vector<40x128xf32>
    %114 = arith.addf %90, %105 : vector<40x1xf32>
    %115 = arith.truncf %113 : vector<40x128xf32> to vector<40x128xbf16>
    %c0_34 = arith.constant 0 : index
    %c0_35 = arith.constant 0 : index
    %116 = vector.load %arg5[%c0_34, %c0_35] : memref<128x128xbf16, #tpu.memory_space<vmem>>, vector<128x128xbf16>
    %cst_36 = arith.constant dense<0.000000e+00> : vector<40x128xf32>
    %117 = tpu.matmul %115, %116, %cst_36 {dimension_numbers = #tpu.dot_dimension_numbers<[1], [0], [0], [1], [0, 0, 1, 1], [], []>} : vector<40x128xbf16>, vector<128x128xbf16>, vector<40x128xf32> -> vector<40x128xf32>
    %cst_37 = arith.constant 1.000000e+00 : f32
    %118 = vector.broadcast %cst_37 : f32 to vector<40x1xf32>
    %119 = arith.divf %118, %114 : vector<40x1xf32>
    %120 = vector.broadcast %119 : vector<40x1xf32> to vector<40x128xf32>
    %121 = arith.mulf %117, %120 : vector<40x128xf32>
    %c0_38 = arith.constant 0 : index
    %c0_39 = arith.constant 0 : index
    %122 = vector.load %arg6[%c0_38, %c0_39] : memref<40x128xf32, #tpu.memory_space<vmem>>, vector<40x128xf32>
    tpu.vector_store %arg6[%c0_38, %c0_39], %121 {strides = array<i32>} : memref<40x128xf32, #tpu.memory_space<vmem>>, vector<40x128xf32>,
    return
  }
  func.func @transform_0(%arg0: i32) -> (i32, i32) {
    %c0_i32 = arith.constant 0 : i32
    %c0_i32_0 = arith.constant 0 : i32
    return %arg0, %c0_i32 : i32, i32
  }
  func.func @transform_1(%arg0: i32) -> (i32, i32) {
    %c0_i32 = arith.constant 0 : i32
    %c0_i32_0 = arith.constant 0 : i32
    %c0_i32_1 = arith.constant 0 : i32
    return %c0_i32, %c0_i32_0 : i32, i32
  }
  func.func @transform_2(%arg0: i32) -> (i32, i32) {
    %c0_i32 = arith.constant 0 : i32
    %c0_i32_0 = arith.constant 0 : i32
    %c0_i32_1 = arith.constant 0 : i32
    return %c0_i32, %c0_i32_0 : i32, i32
  }
  func.func @transform_3(%arg0: i32) -> (i32, i32) {
    %c0_i32 = arith.constant 0 : i32
    %c0_i32_0 = arith.constant 0 : i32
    %c0_i32_1 = arith.constant 0 : i32
    return %c0_i32, %c0_i32_0 : i32, i32
  }
  func.func @transform_4(%arg0: i32) -> (i32, i32) {
    %c0_i32 = arith.constant 0 : i32
    %c0_i32_0 = arith.constant 0 : i32
    %c0_i32_1 = arith.constant 0 : i32
    return %c0_i32, %c0_i32_0 : i32, i32
  }
  func.func @transform_5(%arg0: i32) -> (i32, i32) {
    %c0_i32 = arith.constant 0 : i32
    %c0_i32_0 = arith.constant 0 : i32
    return %arg0, %c0_i32 : i32, i32
  }
}

</mosaic_0001>

<bundles_post_ra>
// kernel: tpu_custom_call.1
= control target key start
LH: loop header
LB: loop body
LE: loop exit
PB: predicated region body
PF: predicated region fallthrough
CT: control target
= control target key end

     0   :  { %10 = vsyncpa [#allocation3], 0  ;;  %s1909_s0 = inlined_call_operand.vmem [shape: f32[40,4], index: 0, kind: input, shape index: {}]   ;;  %s1910_s1 = inlined_call_operand.vmem [shape: f32[4,128], index: 1, kind: input, shape index: {}]   ;;  %s1911_s2 = inlined_call_operand.vmem [shape: f32[4,1], index: 2, kind: input, shape index: {}]   ;;  %s1912_s3 = inlined_call_operand.vmem [shape: f32[4,1], index: 3, kind: input, shape index: {}]   ;;  %s1913_s4 = inlined_call_operand.hbm [shape: bf16[128,128], index: 4, kind: input, shape index: {}]   ;;  %s1914_s5 = inlined_call_operand.hbm [shape: f32[40,128], index: 5, kind: output, shape index: {}]  }
   0x1   :  { %11 = vsyncpa [#allocation4], 0  ;;  %s24_s20 = sshll.u32 %s1913_s4, 4  ;;  %s1204_s21 = smov [#allocation2]   ;;  %s25_s20 = int_to_ptr.hbm [resolvable:$true] %s24_s20 }
   0x2   :  { %s26_s22 = sshll.u32 %s1204_s21, 4  ;;  %s1205_s23 = smov 64   ;;  %s27_s22 = int_to_ptr.vmem [resolvable:$true] %s26_s22 }
   0x3   :  { %s1206_s24 = smov 4  }
   0x4   :  { %32 = dma.hbm_to_vmem [thread:$0]  %s25_s20, 1024, %s27_s22, [#allocation3], %s1205_s23, %s1205_s23, %s1206_s24  }
   0x5   :  { %1200 = dma.done.wait [#allocation3], 1024  }
   0x6   :  { %1201 = vsyncadd [#allocation3], 4294966272  ;;  %v1207_v0 = vmov 0   ;;  %v43_v1 = vld [vmem:[%s1911_s2] sm:$0xf]  ;;  %v39_v3 = vld [vmem:[%s1909_s0 + $0x10] sm:$0xff]  ;;  %v57_v16 = vlaneseq }
   0x7   :  { %1079 = vset.pattern.permute.xlu0 %v1207_v0  ;;  %1080 = vset.pattern.permute.xlu2 %v1207_v0  ;;  %v41_v2 = vld [vmem:[%s1909_s0 + $0x20] sm:$0xff]  ;;  %v115_v5 = vmul.f32 %v39_v3, %v39_v3  ;;  %s1208_s30 = smov 127   ;;  %v40_v6 = vld [vmem:[%s1909_s0 + $0x18] sm:$0xff]  ;;  %v38_v11 = vld [vmem:[%s1909_s0 + $0x8] sm:$0xff]  ;;  %vm138_vm0 = vcmask 23552   ;;  %vm77_vm2 = vcmask 1043456  }
   0x8   :  { %1081 = vset.pattern.permute.xlu1 %v1207_v0  ;;  %46 = vperm.xlu0 %1079, %v43_v1   ;;  %v117_v4 = vmul.f32 %v41_v2, %v41_v2  ;;  %v37_v7 = vld [vmem:[%s1909_s0] sm:$0xff]  ;;  %v116_v9 = vmul.f32 %v40_v6, %v40_v6  ;;  %v114_v12 = vmul.f32 %v38_v11, %v38_v11  ;;  %v58_v20 = vshrl.u32 %v57_v16, 7  ;;  %s1209_s0 = smov [#allocation5]   ;;  %s996_s16 = sshll.u32 %s1914_s5, 4  ;;  %s997_s16 = int_to_ptr.hbm [resolvable:$true] %s996_s16 }
   0x9   :  { %127 = vrot.lane.b32.xlu1 %v115_v5, %s1208_s30  ;;  %v50_v8 = vld [vmem:[%s1912_s3] sm:$0xf]  ;;  %v113_v10 = vmul.f32 %v37_v7, %v37_v7  ;;  %vm61_vm3 = vcmask 31744   ;;  %s1210_s17 = smov 128   ;;  %s1211_s18 = smov 8  }
   0xa   :  { %131 = vrot.lane.b32.xlu2 %v117_v4, %s1208_s30  ;;  %v42_v19 = vld [vmem:[%s1910_s1] sm:$0xf]  ;;  %vm59_vm1 = vcmp.eq.s32.totalorder %v58_v20, 0  ;;  %s994_s1 = sshll.u32 %s1209_s0, 4  ;;  %s995_s1 = int_to_ptr.vmem [resolvable:$true] %s994_s1 }
  0x10   :  { %53 = vperm.xlu0 %1079, %v50_v8  }
  0x11   :  { %129 = vrot.lane.b32.xlu1 %v116_v9, %s1208_s30 }
  0x12   :  { %123 = vrot.lane.b32.xlu2 %v113_v10, %s1208_s30 }
  0x18   :  { %125 = vrot.lane.b32.xlu0 %v114_v12, %s1208_s30 }
  0x1a   :  { %186 = vperm.xlu2 %1080, %v39_v3  }
  0x20   :  { %190 = vperm.xlu0 %1079, %v40_v6  }
  0x64   :  { %v132_v13 = vpop.permute.xlu2 %131 }
  0x65   :  { %v151_v14 = vsel %vm138_vm0, %v132_v13, 0.0 }
  0x66   :  { %152 = vadd.xlane.f32.xlu0 %v151_v14 }
  0x6c   :  { %v124_v29 = vpop.permute.xlu2 %123 }
  0x6d   :  { %v139_v32 = vsel %vm138_vm0, %v124_v29, 0.0 }
  0x74   :  { %v187_v34 = vpop.permute.xlu2 %186 }
  0x7a   :  { %v47_v15 = vpop.permute.xlu0 %46  ;;  %178 = vperm.xlu0 %1079, %v37_v7  }
  0x7b   :  { %v128_v17 = vpop.permute.xlu1 %127  ;;  %v49_v21 = vmul.f32 %v47_v15, %v42_v19 }
  0x7c   :  { %v145_v18 = vsel %vm138_vm0, %v128_v17, 0.0 }
  0x7d   :  { %146 = vadd.xlane.f32.xlu1 %v145_v18 }
  0x82   :  { %v54_v22 = vpop.permute.xlu0 %53 }
  0x83   :  { %v56_v23 = vadd.f32 %v54_v22, %v49_v21  ;;  %v130_v24 = vpop.permute.xlu1 %129 }
  0x84   :  { %v148_v26 = vsel %vm138_vm0, %v130_v24, 0.0 }
  0x85   :  { %v60_v25 = vsel %vm59_vm1, 0.0, %v56_v23  ;;  %149 = vadd.xlane.f32.xlu2 %v148_v26  ;;  %v197_v50 = vperm.slane %v56_v23, 0 }
  0x86   :  { %1009 = vmatpush.msk.msra.mxu0 %vm77_vm2, %v60_v25  ;;  %v154_v27 = vmul.f32 %v60_v25, %v60_v25 }
  0x87   :  { %1010 = vmatmul.msk.f32.vlgmr.msra.gmra.mxu0 %vm61_vm3, %v37_v7  ;;  %vm200_vm6 = vcmp.eq.f32.partialorder %v187_v34, %v197_v50 }
  0x88   :  { %v155_v28 = vsel %vm77_vm2, %v154_v27, 0.0 }
  0x89   :  { %v156_v33 = vrot.slane %v155_v28, 4 }
  0x8a   :  { %v126_v30 = vpop.permute.xlu0 %125 }
  0x8b   :  { %v142_v31 = vsel %vm138_vm0, %v126_v30, 0.0  ;;  %v157_v35 = vadd.f32 %v156_v33, %v155_v28 }
  0x8c   :  { %143 = vadd.xlane.f32.xlu1 %v142_v31 }
  0x8d   :  { %140 = vadd.xlane.f32.xlu2 %v139_v32  ;;  %v158_v36 = vrot.slane %v157_v35, 2 }
  0x8f   :  { %1011 = vmatmul.msk.f32.gmra.mxu0 %vm61_vm3, %v38_v11  ;;  %v159_v39 = vadd.f32 %v158_v36, %v157_v35 }
  0x91   :  { %v160_v40 = vrot.slane %v159_v39, 1 }
  0x92   :  { %v191_v37 = vpop.permute.xlu0 %190 }
  0x93   :  { %v161_v44 = vadd.f32 %v160_v40, %v159_v39  ;;  %vm201_vm7 = vcmp.eq.f32.partialorder %v191_v37, %v197_v50 }
  0x97   :  { %1012 = vmatmul.msk.f32.gmra.mxu0 %vm61_vm3, %v39_v3  ;;  %v1281_v3 = vand.u32 127, %v57_v16 }
  0x9f   :  { %1013 = vmatmul.msk.f32.gmra.mxu0 %vm61_vm3, %v40_v6 }
  0xa5   :  { %194 = vperm.xlu1 %1081, %v41_v2   ;;  %182 = vperm.xlu2 %1080, %v38_v11  }
  0xa7   :  { %1014 = vmatmul.msk.f32.gmra.mxu0 %vm61_vm3, %v41_v2 }
  0xd9   :  { %v153_v41 = vpop.xlane.xlu0 %152 }
  0xda   :  { %v166_v15 = vadd.f32 %v161_v44, %v153_v41 }
  0xec   :  { %v179_v48 = vpop.permute.xlu0 %178 }
  0xed   :  { %vm198_vm4 = vcmp.eq.f32.partialorder %v179_v48, %v197_v50 }
  0xf0   :  { %v147_v42 = vpop.xlane.xlu1 %146 }
  0xf1   :  { %v164_v62 = vadd.f32 %v161_v44, %v147_v42 }
  0xf8   :  { %v150_v38 = vpop.xlane.xlu2 %149 }
  0xf9   :  { %v165_v6 = vadd.f32 %v161_v44, %v150_v38 }
  0xff   :  { %v144_v52 = vpop.xlane.xlu1 %143 }
 0x100   :  { %v141_v43 = vpop.xlane.xlu2 %140  ;;  %v163_v55 = vadd.f32 %v161_v44, %v144_v52 }
 0x101   :  { %v162_v46 = vadd.f32 %v161_v44, %v141_v43  ;;  %v1054_v43 = vld [vmem:[#allocation2 + $0x38] sm:$0xff] }
 0x102   :  { %1055 = vmatpush.bf16.msra.mxu2 %v1054_v43  ;;  %882 = vmatpush.bf16.msra.mxu1 %v1054_v43 }
 0x103   :  { %1056 = vmatpush.bf16.msra.mxu3 %v1054_v43 }
 0x104   :  { %v98_v45 = vpop.f32.mrf.mxu0 }
 0x105   :  { %v167_v47 = vmul.f32 2.0, %v98_v45  ;;  %v1052_v45 = vld [vmem:[#allocation2 + $0x28] sm:$0xff] }
 0x107   :  { %v172_v49 = vsub.f32 %v162_v46, %v167_v47 }
 0x108   :  { %v183_v57 = vpop.permute.xlu2 %182 }
 0x109   :  { %v203_v51 = vmax.f32 %v172_v49, 0.0  ;;  %vm199_vm5 = vcmp.eq.f32.partialorder %v183_v57, %v197_v50 }
 0x10b   :  { %v208_v53 = vsel %vm198_vm4, %v203_v51, 1e+30 }
 0x10c   :  { %v101_v54 = vpop.f32.mrf.mxu0  ;;  %v220_v11 = vand.u32 4294967168, %v208_v53 }
 0x10d   :  { %v168_v56 = vmul.f32 2.0, %v101_v54 }
 0x10e   :  { %v225_v18 = vor.u32 %v220_v11, %v1281_v3 }
 0x10f   :  { %v173_v58 = vsub.f32 %v163_v55, %v168_v56 }
 0x111   :  { %v204_v59 = vmax.f32 %v173_v58, 0.0 }
 0x113   :  { %v209_v60 = vsel %vm199_vm5, %v204_v59, 1e+30 }
 0x114   :  { %v104_v61 = vpop.f32.mrf.mxu0  ;;  %v221_v22 = vand.u32 4294967168, %v209_v60 }
 0x115   :  { %v169_v63 = vmul.f32 2.0, %v104_v61 }
 0x116   :  { %v226_v25 = vor.u32 %v221_v22, %v1281_v3 }
 0x117   :  { %v174_v0 = vsub.f32 %v164_v62, %v169_v63  ;;  %v195_v19 = vpop.permute.xlu1 %194 }
 0x118   :  { %vm202_vm8 = vcmp.eq.f32.partialorder %v195_v19, %v197_v50 }
 0x119   :  { %v205_v1 = vmax.f32 %v174_v0, 0.0 }
 0x11b   :  { %v210_v2 = vsel %vm200_vm6, %v205_v1, 1e+30 }
 0x11c   :  { %v107_v4 = vpop.f32.mrf.mxu0  ;;  %v222_v5 = vand.u32 4294967168, %v210_v2 }
 0x11d   :  { %v170_v7 = vmul.f32 2.0, %v107_v4 }
 0x11e   :  { %v227_v8 = vor.u32 %v222_v5, %v1281_v3 }
 0x11f   :  { %v175_v9 = vsub.f32 %v165_v6, %v170_v7 }
 0x120   :  { %239 = vmin.xlane.f32.xlu1 %v227_v8 }
 0x121   :  { %v206_v10 = vmax.f32 %v175_v9, 0.0 }
 0x123   :  { %v211_v12 = vsel %vm201_vm7, %v206_v10, 1e+30 }
 0x124   :  { %v110_v13 = vpop.f32.mrf.mxu0  ;;  %v223_v14 = vand.u32 4294967168, %v211_v12 }
 0x125   :  { %v171_v17 = vmul.f32 2.0, %v110_v13 }
 0x126   :  { %v228_v16 = vor.u32 %v223_v14, %v1281_v3 }
 0x127   :  { %v176_v20 = vsub.f32 %v166_v15, %v171_v17 }
 0x128   :  { %235 = vmin.xlane.f32.xlu1 %v225_v18  ;;  %241 = vmin.xlane.f32.xlu0 %v228_v16 }
 0x129   :  { %v207_v21 = vmax.f32 %v176_v20, 0.0 }
 0x12b   :  { %v212_v23 = vsel %vm202_vm8, %v207_v21, 1e+30 }
 0x12c   :  { %v224_v24 = vand.u32 4294967168, %v212_v23 }
 0x12e   :  { %v229_v26 = vor.u32 %v224_v24, %v1281_v3 }
 0x130   :  { %237 = vmin.xlane.f32.xlu0 %v226_v25  ;;  %243 = vmin.xlane.f32.xlu2 %v229_v26 }
 0x193   :  { %v240_v27 = vpop.xlane.xlu1 %239 }
 0x194   :  { %v252_v28 = vand.u32 127, %v240_v27  ;;  %v257_v47 = vand.u32 4294967168, %v240_v27 }
 0x196   :  { %vm1289_vm9 = vcmp.eq.s32.totalorder %v1281_v3, %v252_v28  ;;  %1082 = vrsqrt.f32 %v257_v47  ;;  %vm296_vm14 = vcmp.eq.f32.partialorder %v257_v47, inf  ;;  %v299_v5 = vand.u32 2147483648, %v257_v47 }
 0x197   :  { %v1295_v30 = vsel %vm1289_vm9, 2e+30, %v227_v8  ;;  %vm298_vm15 = vcmp.eq.f32.partialorder %v257_v47, 0.0 }
 0x198   :  { %434 = vmin.xlane.f32.xlu2 %v1295_v30 }
 0x19b   :  { %v236_v31 = vpop.xlane.xlu1 %235  ;;  %v242_v32 = vpop.xlane.xlu0 %241 }
 0x19c   :  { %v250_v33 = vand.u32 127, %v236_v31  ;;  %v253_v34 = vand.u32 127, %v242_v32  ;;  %v1083_v48 = vpop.eup %1082  ;;  %v258_v50 = vand.u32 4294967168, %v242_v32  ;;  %v255_v51 = vand.u32 4294967168, %v236_v31 }
 0x19d   :  { %v290_v49 = vmul.f32 %v1083_v48, %v257_v47 }
 0x19e   :  { %vm1299_vm10 = vcmp.eq.s32.totalorder %v1281_v3, %v253_v34  ;;  %vm1308_vm11 = vcmp.eq.s32.totalorder %v1281_v3, %v250_v33  ;;  %1084 = vrsqrt.f32 %v258_v50  ;;  %vm308_vm0 = vcmp.eq.f32.partialorder %v258_v50, inf }
 0x19f   :  { %v1305_v36 = vsel %vm1299_vm10, 2e+30, %v228_v16  ;;  %v1315_v38 = vsel %vm1308_vm11, 2e+30, %v225_v18  ;;  %v291_v52 = vmul.f32 %v1083_v48, %v290_v49  ;;  %1086 = vrsqrt.f32 %v255_v51 }
 0x1a0   :  { %436 = vmin.xlane.f32.xlu1 %v1305_v36  ;;  %430 = vmin.xlane.f32.xlu2 %v1315_v38  ;;  %vm272_vm1 = vcmp.eq.f32.partialorder %v255_v51, inf  ;;  %v311_v22 = vand.u32 2147483648, %v258_v50  ;;  %vm310_vm2 = vcmp.eq.f32.partialorder %v258_v50, 0.0  ;;  %vm274_vm3 = vcmp.eq.f32.partialorder %v255_v51, 0.0 }
 0x1a1   :  { %v292_v53 = vmul.f32 0.5, %v291_v52 }
 0x1a3   :  { %v238_v39 = vpop.xlane.xlu0 %237  ;;  %v244_v40 = vpop.xlane.xlu2 %243  ;;  %v293_v55 = vsub.f32 1.5, %v292_v53 }
 0x1a4   :  { %v251_v41 = vand.u32 127, %v238_v39  ;;  %v254_v42 = vand.u32 127, %v244_v40  ;;  %v1085_v54 = vpop.eup %1084  ;;  %v1338_v60 = vand.u32 4294967168, %v238_v39  ;;  %v1340_v62 = vand.u32 4294967168, %v244_v40 }
 0x1a5   :  { %v1087_v56 = vpop.eup %1086  ;;  %v302_v57 = vmul.f32 %v1085_v54, %v258_v50  ;;  %v294_v58 = vmul.f32 %v1083_v48, %v293_v55 }
 0x1a6   :  { %vm1319_vm12 = vcmp.eq.s32.totalorder %v1281_v3, %v251_v41  ;;  %vm1329_vm13 = vcmp.eq.s32.totalorder %v1281_v3, %v254_v42  ;;  %v266_v59 = vmul.f32 %v1087_v56, %v255_v51  ;;  %1088 = vrsqrt.f32 %v1338_v60 }
 0x1a7   :  { %v1325_v44 = vsel %vm1319_vm12, 2e+30, %v226_v25  ;;  %v1335_v46 = vsel %vm1329_vm13, 2e+30, %v229_v26  ;;  %v303_v61 = vmul.f32 %v1085_v54, %v302_v57  ;;  %v295_v63 = vmul.f32 %v294_v58, %v257_v47 }
 0x1a8   :  { %432 = vmin.xlane.f32.xlu1 %v1325_v44  ;;  %438 = vmin.xlane.f32.xlu0 %v1335_v46  ;;  %v267_v0 = vmul.f32 %v1087_v56, %v266_v59  ;;  %1090 = vrsqrt.f32 %v1340_v62  ;;  %v275_v26 = vand.u32 2147483648, %v255_v51  ;;  %vm284_vm5 = vcmp.eq.f32.partialorder %v1338_v60, inf }
 0x1a9   :  { %v304_v1 = vmul.f32 0.5, %v303_v61  ;;  %v297_v2 = vsel %vm296_vm14, %v257_v47, %v295_v63  ;;  %vm286_vm6 = vcmp.eq.f32.partialorder %v1338_v60, 0.0  ;;  %v287_v53 = vand.u32 2147483648, %v1338_v60 }
 0x1aa   :  { %v268_v4 = vmul.f32 0.5, %v267_v0  ;;  %v300_v6 = vsel %vm298_vm15, %v299_v5, %v297_v2  ;;  %vm320_vm7 = vcmp.eq.f32.partialorder %v1340_v62, inf }
 0x1ab   :  { %v305_v7 = vsub.f32 1.5, %v304_v1  ;;  %v1344_v11 = vadd.f32 1e-08, %v300_v6 }
 0x1ac   :  { %v1089_v8 = vpop.eup %1088  ;;  %v269_v9 = vsub.f32 1.5, %v268_v4 }
 0x1ad   :  { %v306_v12 = vmul.f32 %v1085_v54, %v305_v7  ;;  %v278_v14 = vmul.f32 %v1089_v8, %v1338_v60  ;;  %1092 = vrcp.f32 %v1344_v11  ;;  %v369_v1 = vand.u32 2147483647, %v1344_v11 }
 0x1ae   :  { %v1091_v10 = vpop.eup %1090  ;;  %v270_v13 = vmul.f32 %v1087_v56, %v269_v9  ;;  %v371_v2 = vand.u32 2147483648, %v1344_v11 }
 0x1af   :  { %v314_v15 = vmul.f32 %v1091_v10, %v1340_v62  ;;  %v307_v17 = vmul.f32 %v306_v12, %v258_v50  ;;  %v279_v16 = vmul.f32 %v1089_v8, %v278_v14  ;;  %v323_v14 = vand.u32 2147483648, %v1340_v62 }
 0x1b0   :  { %v271_v18 = vmul.f32 %v270_v13, %v255_v51 }
 0x1b1   :  { %v315_v19 = vmul.f32 %v1091_v10, %v314_v15  ;;  %v309_v20 = vsel %vm308_vm0, %v258_v50, %v307_v17  ;;  %v280_v24 = vmul.f32 0.5, %v279_v16  ;;  %vm322_vm0 = vcmp.eq.f32.partialorder %v1340_v62, 0.0 }
 0x1b2   :  { %v273_v23 = vsel %vm272_vm1, %v255_v51, %v271_v18  ;;  %v312_v27 = vsel %vm310_vm2, %v311_v22, %v309_v20  ;;  %vm365_vm1 = vweird.f32 %v1344_v11 }
 0x1b3   :  { %v1349_v21 = vpop.eup %1092  ;;  %v316_v25 = vmul.f32 0.5, %v315_v19  ;;  %v276_v31 = vsel %vm274_vm3, %v275_v26, %v273_v23  ;;  %v281_v33 = vsub.f32 1.5, %v280_v24  ;;  %v1355_v41 = vadd.f32 1e-08, %v312_v27 }
 0x1b4   :  { %v361_v28 = vmul.f32 %v1349_v21, %v1344_v11  ;;  %v1358_v47 = vadd.f32 1e-08, %v276_v31  ;;  %vm366_vm8 = vweird.f32 %v1349_v21  ;;  %vm1433_vm3 = vcmp.eq.f32.partialorder %v369_v1, 8.507059e+37 }
 0x1b5   :  { %v317_v34 = vsub.f32 1.5, %v316_v25  ;;  %v282_v49 = vmul.f32 %v1089_v8, %v281_v33  ;;  %v384_v16 = vand.u32 2147483647, %v1355_v41  ;;  %vm1422_vm2 = vmor %vm365_vm1, %vm366_vm8 }
 0x1b6   :  { %v362_v42 = vsub.f32 1.0, %v361_v28  ;;  %v339_v26 = vand.u32 2147483647, %v1358_v47 }
 0x1b7   :  { %v318_v50 = vmul.f32 %v1091_v10, %v317_v34  ;;  %v283_v56 = vmul.f32 %v282_v49, %v1338_v60 }
 0x1b8   :  { %v363_v52 = vmul.f32 %v1349_v21, %v362_v42 }
 0x1b9   :  { %v319_v57 = vmul.f32 %v318_v50, %v1340_v62  ;;  %v285_v8 = vsel %vm284_vm5, %v1338_v60, %v283_v56  ;;  %v341_v60 = vand.u32 2147483648, %v1358_v47 }
 0x1ba   :  { %v1389_v5 = vadd.f32 %v1349_v21, %v363_v52 }
 0x1bb   :  { %v321_v9 = vsel %vm320_vm7, %v1340_v62, %v319_v57  ;;  %v386_v62 = vand.u32 2147483648, %v1355_v41 }
 0x1bc   :  { %v324_v20 = vsel %vm322_vm0, %v323_v14, %v321_v9  ;;  %v368_v23 = vsel %vm1422_vm2, %v1349_v21, %v1389_v5  ;;  %v1938_v9 = vmov 0  ;;  %v1483_v14 = vor.u32 1.1754944e-38, %v341_v60 }
 0x1bd   :  { %v1446_v42 = vadd.f32 1e-08, %v324_v20 }
 0x20b   :  { %v435_v32 = vpop.xlane.xlu2 %434 }
 0x20c   :  { %v447_v39 = vand.u32 127, %v435_v32  ;;  %v1353_v40 = vand.u32 4294967168, %v435_v32 }
 0x20e   :  { %1094 = vrsqrt.f32 %v1353_v40  ;;  %vm1361_vm4 = vcmp.eq.s32.totalorder %v1281_v3, %v447_v39  ;;  %vm491_vm5 = vcmp.eq.f32.partialorder %v1353_v40, inf }
 0x20f   :  { %v622_v51 = vsel %vm1361_vm4, 2e+30, %v1295_v30  ;;  %1096 = vrcp.f32 %v1355_v41 }
 0x210   :  { %629 = vmin.xlane.f32.xlu0 %v622_v51  ;;  %1098 = vrcp.f32 %v1358_v47 }
 0x213   :  { %v437_v54 = vpop.xlane.xlu1 %436  ;;  %v431_v59 = vpop.xlane.xlu2 %430 }
 0x214   :  { %v1095_v55 = vpop.eup %1094  ;;  %v448_v30 = vand.u32 127, %v437_v54  ;;  %v1376_v58 = vand.u32 4294967168, %v437_v54  ;;  %v445_v63 = vand.u32 127, %v431_v59  ;;  %v1380_v0 = vand.u32 4294967168, %v431_v59 }
 0x215   :  { %v485_v61 = vmul.f32 %v1095_v55, %v1353_v40  ;;  %v1386_v4 = vpop.eup %1096 }
 0x216   :  { %1100 = vrsqrt.f32 %v1376_v58  ;;  %vm1393_vm14 = vcmp.eq.s32.totalorder %v1281_v3, %v448_v30  ;;  %vm1405_vm15 = vcmp.eq.s32.totalorder %v1281_v3, %v445_v63  ;;  %v1409_v13 = vpop.eup %1098  ;;  %v376_v18 = vmul.f32 %v1386_v4, %v1355_v41 }
 0x217   :  { %v486_v6 = vmul.f32 %v1095_v55, %v485_v61  ;;  %1102 = vrsqrt.f32 %v1380_v0  ;;  %v623_v10 = vsel %vm1393_vm14, 2e+30, %v1305_v36  ;;  %v620_v17 = vsel %vm1405_vm15, 2e+30, %v1315_v38 }
 0x218   :  { %631 = vmin.xlane.f32.xlu2 %v623_v10  ;;  %v372_v36 = vor.u32 1.1754944e-38, %v371_v2  ;;  %625 = vmin.xlane.f32.xlu0 %v620_v17  ;;  %v288_v38 = vsel %vm286_vm6, %v287_v53, %v285_v8  ;;  %v331_v25 = vmul.f32 %v1409_v13, %v1358_v47  ;;  %v377_v21 = vsub.f32 1.0, %v376_v18 }
 0x219   :  { %v487_v15 = vmul.f32 0.5, %v486_v6  ;;  %v1444_v39 = vadd.f32 1e-08, %v288_v38  ;;  %v494_v53 = vand.u32 2147483648, %v1353_v40  ;;  %vm493_vm6 = vcmp.eq.f32.partialorder %v1353_v40, 0.0 }
 0x21a   :  { %v332_v2 = vsub.f32 1.0, %v331_v25  ;;  %v1469_v6 = vor.u32 1.1754944e-38, %v386_v62  ;;  %vm381_vm1 = vweird.f32 %v1386_v4  ;;  %v378_v62 = vmul.f32 %v1386_v4, %v377_v21 }
 0x21b   :  { %v488_v11 = vsub.f32 1.5, %v487_v15  ;;  %v433_v27 = vpop.xlane.xlu1 %432  ;;  %v439_v50 = vpop.xlane.xlu0 %438  ;;  %vm467_vm0 = vcmp.eq.f32.partialorder %v1380_v0, inf  ;;  %v470_v24 = vand.u32 2147483648, %v1380_v0  ;;  %vm469_vm2 = vcmp.eq.f32.partialorder %v1380_v0, 0.0 }
 0x21c   :  { %v1101_v22 = vpop.eup %1100  ;;  %v446_v33 = vand.u32 127, %v433_v27  ;;  %v1442_v34 = vand.u32 4294967168, %v433_v27  ;;  %v1453_v56 = vand.u32 4294967168, %v439_v50  ;;  %v356_v29 = vand.u32 2147483648, %v1444_v39 }
 0x21d   :  { %v1103_v28 = vpop.eup %1102  ;;  %v489_v31 = vmul.f32 %v1095_v55, %v488_v11  ;;  %v497_v32 = vmul.f32 %v1101_v22, %v1376_v58  ;;  %v449_v55 = vand.u32 127, %v439_v50 }
 0x21e   :  { %v461_v49 = vmul.f32 %v1103_v28, %v1380_v0  ;;  %1104 = vrsqrt.f32 %v1442_v34  ;;  %vm1458_vm7 = vcmp.eq.s32.totalorder %v1281_v3, %v446_v33  ;;  %v1510_v33 = vadd.f32 %v1386_v4, %v378_v62 }
 0x21f   :  { %v490_v51 = vmul.f32 %v489_v31, %v1353_v40  ;;  %v498_v52 = vmul.f32 %v1101_v22, %v497_v32  ;;  %1106 = vrsqrt.f32 %v1453_v56  ;;  %v621_v1 = vsel %vm1458_vm7, 2e+30, %v1325_v44 }
 0x220   :  { %v462_v54 = vmul.f32 %v1103_v28, %v461_v49  ;;  %1108 = vrcp.f32 %v1444_v39  ;;  %627 = vmin.xlane.f32.xlu2 %v621_v1  ;;  %vm1473_vm8 = vcmp.eq.s32.totalorder %v1281_v3, %v449_v55  ;;  %v1479_v44 = vsel %vm1433_vm3, %v372_v36, %v368_v23 }
 0x221   :  { %v492_v57 = vsel %vm491_vm5, %v1353_v40, %v490_v51  ;;  %v499_v30 = vmul.f32 0.5, %v498_v52  ;;  %1110 = vrcp.f32 %v1446_v42  ;;  %v1939_v9 = vsel %vm1473_vm8, 4294967295, %v1938_v9 }
 0x222   :  { %v495_v61 = vsel %vm493_vm6, %v494_v53, %v492_v57  ;;  %v463_v63 = vmul.f32 0.5, %v462_v54  ;;  %v624_v19 = vsel %vm1473_vm8, 2e+30, %v1335_v46  ;;  %v333_v36 = vmul.f32 %v1409_v13, %v332_v2 }
 0x223   :  { %v1467_v5 = vadd.f32 1e-08, %v495_v61  ;;  %v500_v40 = vsub.f32 1.5, %v499_v30  ;;  %vm336_vm3 = vweird.f32 %v1409_v13  ;;  %vm503_vm5 = vcmp.eq.f32.partialorder %v1376_v58, inf  ;;  %633 = vmin.xlane.f32.xlu1 %v624_v19 }
 0x224   :  { %v464_v8 = vsub.f32 1.5, %v463_v63  ;;  %v1105_v10 = vpop.eup %1104  ;;  %vm505_vm6 = vcmp.eq.f32.partialorder %v1376_v58, 0.0  ;;  %v506_v23 = vand.u32 2147483648, %v1376_v58  ;;  %v1513_v51 = vadd.f32 %v1409_v13, %v333_v36 }
 0x225   :  { %1112 = vrcp.f32 %v1467_v5  ;;  %v501_v15 = vmul.f32 %v1101_v22, %v500_v40  ;;  %v473_v18 = vmul.f32 %v1105_v10, %v1442_v34  ;;  %v1107_v38 = vpop.eup %1106  ;;  %v412_v30 = vsel %vm1289_vm9, %v1479_v44, 0.0 }
 0x226   :  { %v465_v17 = vmul.f32 %v1103_v28, %v464_v8  ;;  %v1498_v46 = vpop.eup %1108  ;;  %v509_v25 = vmul.f32 %v1107_v38, %v1453_v56  ;;  %v354_v63 = vand.u32 2147483647, %v1444_v39  ;;  %v566_v40 = vand.u32 2147483648, %v1467_v5 }
 0x227   :  { %v502_v20 = vmul.f32 %v501_v15, %v1376_v58  ;;  %v474_v22 = vmul.f32 %v1105_v10, %v473_v18  ;;  %v1504_v60 = vpop.eup %1110  ;;  %vm1943_vm9 = vweird.f32 %v1358_v47 }
 0x228   :  { %v466_v11 = vmul.f32 %v465_v17, %v1380_v0  ;;  %v510_v50 = vmul.f32 %v1107_v38, %v509_v25  ;;  %v1526_v54 = vmul.f32 %v1504_v60, %v1446_v42  ;;  %v564_v17 = vand.u32 2147483647, %v1467_v5 }
 0x229   :  { %v504_v27 = vsel %vm503_vm5, %v1376_v58, %v502_v20  ;;  %v475_v31 = vmul.f32 0.5, %v474_v22 }
 0x22a   :  { %v468_v28 = vsel %vm467_vm0, %v1380_v0, %v466_v11  ;;  %v507_v21 = vsel %vm505_vm6, %v506_v23, %v504_v27  ;;  %v1522_v0 = vmul.f32 %v1498_v46, %v1444_v39  ;;  %v511_v57 = vmul.f32 0.5, %v510_v50 }
 0x22b   :  { %v1113_v32 = vpop.eup %1112  ;;  %v471_v49 = vsel %vm469_vm2, %v470_v24, %v468_v28  ;;  %v1516_v53 = vadd.f32 1e-08, %v507_v21  ;;  %v476_v55 = vsub.f32 1.5, %v475_v31  ;;  %vm1940_vm0 = vweird.f32 %v1355_v41 }
 0x22c   :  { %v556_v52 = vmul.f32 %v1113_v32, %v1467_v5  ;;  %v1518_v58 = vadd.f32 1e-08, %v471_v49  ;;  %vm1535_vm2 = vmor %vm1940_vm0, %vm381_vm1  ;;  %vm561_vm5 = vweird.f32 %v1113_v32  ;;  %v512_v18 = vsub.f32 1.5, %v511_v57 }
 0x22d   :  { %1114 = vrcp.f32 %v1516_v53  ;;  %v383_v2 = vsel %vm1535_vm2, %v1386_v4, %v1510_v33  ;;  %vm1552_vm1 = vmor %vm1943_vm9, %vm336_vm3  ;;  %v347_v19 = vsub.f32 1.0, %v1522_v0  ;;  %v392_v62 = vsub.f32 1.0, %v1526_v54 }
 0x22e   :  { %v557_v1 = vsub.f32 1.0, %v556_v52  ;;  %1116 = vrcp.f32 %v1518_v58  ;;  %v338_v4 = vsel %vm1552_vm1, %v1409_v13, %v1513_v51  ;;  %v477_v36 = vmul.f32 %v1105_v10, %v476_v55 }
 0x22f   :  { %vm1565_vm3 = vcmp.eq.f32.partialorder %v384_v16, 8.507059e+37  ;;  %vm560_vm6 = vweird.f32 %v1467_v5  ;;  %vm479_vm0 = vcmp.eq.f32.partialorder %v1442_v34, inf  ;;  %v513_v22 = vmul.f32 %v1107_v38, %v512_v18 }
 0x230   :  { %v558_v15 = vmul.f32 %v1113_v32, %v557_v1  ;;  %vm562_vm2 = vmor %vm560_vm6, %vm561_vm5  ;;  %v567_v23 = vor.u32 1.1754944e-38, %v566_v40  ;;  %v478_v13 = vmul.f32 %v477_v36, %v1442_v34  ;;  %vm481_vm9 = vcmp.eq.f32.partialorder %v1442_v34, 0.0 }
 0x231   :  { %v482_v10 = vand.u32 2147483648, %v1442_v34  ;;  %vm1576_vm1 = vcmp.eq.f32.partialorder %v339_v26, 8.507059e+37  ;;  %vm565_vm8 = vcmp.eq.f32.partialorder %v564_v17, 8.507059e+37  ;;  %v514_v5 = vmul.f32 %v513_v22, %v1453_v56 }
 0x232   :  { %v559_v11 = vadd.f32 %v1113_v32, %v558_v15  ;;  %vm515_vm5 = vcmp.eq.f32.partialorder %v1453_v56, inf  ;;  %v480_v28 = vsel %vm479_vm0, %v1442_v34, %v478_v13  ;;  %vm517_vm6 = vcmp.eq.f32.partialorder %v1453_v56, 0.0 }
 0x233   :  { %v1115_v24 = vpop.eup %1114  ;;  %v579_v26 = vand.u32 2147483647, %v1516_v53  ;;  %v483_v49 = vsel %vm481_vm9, %v482_v10, %v480_v28  ;;  %v516_v50 = vsel %vm515_vm5, %v1453_v56, %v514_v5  ;;  %v581_v51 = vand.u32 2147483648, %v1516_v53 }
 0x234   :  { %v563_v16 = vsel %vm562_vm2, %v1113_v32, %v559_v11  ;;  %v1117_v38 = vpop.eup %1116  ;;  %v571_v27 = vmul.f32 %v1115_v24, %v1516_v53  ;;  %v518_v32 = vand.u32 2147483648, %v1453_v56  ;;  %v1601_v0 = vadd.f32 1e-08, %v483_v49 }
 0x235   :  { %v1582_v25 = vsel %vm565_vm8, %v567_v23, %v563_v16  ;;  %v526_v31 = vmul.f32 %v1117_v38, %v1518_v58  ;;  %v536_v55 = vand.u32 2147483648, %v1518_v58  ;;  %vm531_vm8 = vweird.f32 %v1117_v38 }
 0x236   :  { %v607_v47 = vsel %vm1361_vm4, %v1582_v25, 0.0  ;;  %v572_v21 = vsub.f32 1.0, %v571_v27  ;;  %v519_v48 = vsel %vm517_vm6, %v518_v32, %v516_v50  ;;  %vm576_vm4 = vweird.f32 %v1115_v24  ;;  %v1048_v27 = vld [vmem:[#allocation2 + $0x8] sm:$0xff] }
 0x237   :  { %v1595_v33 = vadd.f32 %v607_v47, %v412_v30  ;;  %v527_v52 = vsub.f32 1.0, %v526_v31  ;;  %v1604_v57 = vadd.f32 1e-08, %v519_v48  ;;  %v534_v61 = vand.u32 2147483647, %v1518_v58 }
 0x238   :  { %v573_v54 = vmul.f32 %v1115_v24, %v572_v21  ;;  %1118 = vrcp.f32 %v1601_v0  ;;  %v1611_v34 = vsel %vm1565_vm3, %v1469_v6, %v383_v2  ;;  %vm575_vm0 = vweird.f32 %v1516_v53 }
 0x239   :  { %v528_v30 = vmul.f32 %v1117_v38, %v527_v52  ;;  %1120 = vrcp.f32 %v1604_v57  ;;  %v348_v1 = vmul.f32 %v1498_v46, %v347_v19  ;;  %vm577_vm2 = vmor %vm575_vm0, %vm576_vm4  ;;  %v582_v40 = vor.u32 1.1754944e-38, %v581_v51 }
 0x23a   :  { %v574_v56 = vadd.f32 %v1115_v24, %v573_v54  ;;  %vm530_vm9 = vweird.f32 %v1518_v58  ;;  %v1620_v15 = vsel %vm1576_vm1, %v1483_v14, %v338_v4  ;;  %vm580_vm3 = vcmp.eq.f32.partialorder %v579_v26, 8.507059e+37 }
 0x23b   :  { %v529_v8 = vadd.f32 %v1117_v38, %v528_v30  ;;  %vm532_vm5 = vmor %vm530_vm9, %vm531_vm8  ;;  %v537_v6 = vor.u32 1.1754944e-38, %v536_v55  ;;  %v393_v53 = vmul.f32 %v1504_v60, %v392_v62  ;;  %vm535_vm6 = vcmp.eq.f32.partialorder %v534_v61, 8.507059e+37 }
 0x23c   :  { %v578_v17 = vsel %vm577_vm2, %v1115_v24, %v574_v56  ;;  %v413_v58 = vsel %vm1299_vm10, %v1611_v34, 0.0  ;;  %vm351_vm4 = vweird.f32 %v1498_v46  ;;  %v410_v62 = vsel %vm1308_vm11, %v1620_v15, 0.0 }
 0x23d   :  { %v1624_v2 = vsel %vm580_vm3, %v582_v40, %v578_v17  ;;  %v533_v18 = vsel %vm532_vm5, %v1117_v38, %v529_v8  ;;  %v349_v36 = vadd.f32 %v1498_v46, %v348_v1  ;;  %vm350_vm10 = vweird.f32 %v1444_v39  ;;  %v1053_v40 = vld [vmem:[#allocation2 + $0x30] sm:$0xff] }
 0x23e   :  { %v608_v14 = vsel %vm1393_vm14, %v1624_v2, 0.0  ;;  %v1633_v4 = vsel %vm535_vm6, %v537_v6, %v533_v18  ;;  %v1119_v19 = vpop.eup %1118  ;;  %vm1650_vm14 = vcmp.eq.f32.partialorder %v354_v63, 8.507059e+37  ;;  %v394_v23 = vadd.f32 %v1504_v60, %v393_v53  ;;  %1057 = vmatpush.bf16.msra.mxu2 %v1053_v40  ;;  %883 = vmatpush.bf16.msra.mxu1 %v1053_v40 }
 0x23f   :  { %v1639_v20 = vadd.f32 %v608_v14, %v413_v58  ;;  %v605_v35 = vsel %vm1405_vm15, %v1633_v4, 0.0  ;;  %v1121_v11 = vpop.eup %1120  ;;  %v541_v22 = vmul.f32 %v1119_v19, %v1601_v0  ;;  %vm396_vm11 = vweird.f32 %v1504_v60  ;;  %vm1659_vm15 = vmor %vm350_vm10, %vm351_vm4  ;;  %1058 = vmatpush.bf16.msra.mxu3 %v1053_v40  ;;  %v1051_v58 = vld [vmem:[#allocation2 + $0x20] sm:$0xff] }
 0x240   :  { %v1645_v7 = vadd.f32 %v605_v35, %v410_v62  ;;  %v586_v12 = vmul.f32 %v1121_v11, %v1604_v57  ;;  %v357_v10 = vor.u32 1.1754944e-38, %v356_v29  ;;  %v399_v63 = vand.u32 2147483647, %v1446_v42  ;;  %v1050_v62 = vld [vmem:[#allocation2 + $0x18] sm:$0xff] }
 0x241   :  { %v401_v24 = vand.u32 2147483648, %v1446_v42  ;;  %v542_v41 = vsub.f32 1.0, %v541_v22  ;;  %v353_v16 = vsel %vm1659_vm15, %v1498_v46, %v349_v36  ;;  %vm395_vm1 = vweird.f32 %v1446_v42 }
 0x242   :  { %v551_v5 = vand.u32 2147483648, %v1601_v0  ;;  %v587_v38 = vsub.f32 1.0, %v586_v12  ;;  %vm1672_vm8 = vmor %vm395_vm1, %vm396_vm11  ;;  %vm546_vm0 = vweird.f32 %v1119_v19  ;;  %v549_v29 = vand.u32 2147483647, %v1601_v0  ;;  %1059 = vmatpush.bf16.msra.mxu2 %v1052_v45  ;;  %884 = vmatpush.bf16.msra.mxu1 %v1052_v45  ;;  %v1049_v12 = vld [vmem:[#allocation2 + $0x10] sm:$0xff] }
 0x243   :  { %v543_v39 = vmul.f32 %v1119_v19, %v542_v41  ;;  %v596_v28 = vand.u32 2147483648, %v1604_v57  ;;  %v398_v47 = vsel %vm1672_vm8, %v1504_v60, %v394_v23  ;;  %vm591_vm2 = vweird.f32 %v1121_v11  ;;  %1060 = vmatpush.bf16.msra.mxu3 %v1052_v45 }
 0x244   :  { %v588_v46 = vmul.f32 %v1121_v11, %v587_v38  ;;  %v594_v42 = vand.u32 2147483647, %v1604_v57  ;;  %vm400_vm9 = vcmp.eq.f32.partialorder %v399_v63, 8.507059e+37  ;;  %v402_v26 = vor.u32 1.1754944e-38, %v401_v24 }
 0x245   :  { %v544_v31 = vadd.f32 %v1119_v19, %v543_v39  ;;  %vm545_vm3 = vweird.f32 %v1601_v0  ;;  %v1685_v32 = vsel %vm1650_vm14, %v357_v10, %v353_v16  ;;  %v552_v21 = vor.u32 1.1754944e-38, %v551_v5 }
 0x246   :  { %vm547_vm5 = vmor %vm545_vm3, %vm546_vm0  ;;  %v589_v49 = vadd.f32 %v1121_v11, %v588_v46  ;;  %vm590_vm6 = vweird.f32 %v1604_v57  ;;  %v1688_v50 = vsel %vm400_vm9, %v402_v26, %v398_v47  ;;  %vm550_vm4 = vcmp.eq.f32.partialorder %v549_v29, 8.507059e+37  ;;  %1061 = vmatpush.bf16.msra.mxu2 %v1051_v58  ;;  %885 = vmatpush.bf16.msra.mxu1 %v1051_v58 }
 0x247   :  { %v548_v60 = vsel %vm547_vm5, %v1119_v19, %v544_v31  ;;  %vm592_vm10 = vmor %vm590_vm6, %vm591_vm2  ;;  %v597_v51 = vor.u32 1.1754944e-38, %v596_v28  ;;  %vm595_vm11 = vcmp.eq.f32.partialorder %v594_v42, 8.507059e+37  ;;  %v411_v0 = vsel %vm1319_vm12, %v1685_v32, 0.0  ;;  %1062 = vmatpush.bf16.msra.mxu3 %v1051_v58 }
 0x248   :  { %v1690_v52 = vsel %vm550_vm4, %v552_v21, %v548_v60  ;;  %v593_v48 = vsel %vm592_vm10, %v1121_v11, %v589_v49  ;;  %v414_v57 = vsel %vm1329_vm13, %v1688_v50, 0.0  ;;  %vm1956_vm14 = vnez %v1939_v9  ;;  %v1047_v21 = vld [vmem:[#allocation2] sm:$0xff] }
 0x249   :  { %v606_v54 = vsel %vm1458_vm7, %v1690_v52, 0.0  ;;  %v1698_v55 = vsel %vm595_vm11, %v597_v51, %v593_v48 }
 0x24a   :  { %v1703_v30 = vadd.f32 %v606_v54, %v411_v0  ;;  %v609_v61 = vsel %vm1956_vm14, %v1698_v55, 0.0  ;;  %1063 = vmatpush.bf16.msra.mxu2 %v1050_v62  ;;  %886 = vmatpush.bf16.msra.mxu1 %v1050_v62 }
 0x24b   :  { %v1708_v56 = vadd.f32 %v609_v61, %v414_v57  ;;  %1064 = vmatpush.bf16.msra.mxu3 %v1050_v62 }
 0x24e   :  { %1065 = vmatpush.bf16.msra.mxu2 %v1049_v12  ;;  %887 = vmatpush.bf16.msra.mxu1 %v1049_v12 }
 0x24f   :  { %1066 = vmatpush.bf16.msra.mxu3 %v1049_v12 }
 0x252   :  { %1067 = vmatpush.bf16.msra.mxu2 %v1048_v27  ;;  %888 = vmatpush.bf16.msra.mxu1 %v1048_v27 }
 0x253   :  { %1068 = vmatpush.bf16.msra.mxu3 %v1048_v27 }
 0x256   :  { %1069 = vmatpush.bf16.msra.mxu2 %v1047_v21  ;;  %889 = vmatpush.bf16.msra.mxu1 %v1047_v21 }
 0x257   :  { %1070 = vmatpush.bf16.msra.mxu3 %v1047_v21 }
 0x283   :  { %v1710_v1 = vpop.xlane.xlu0 %629 }
 0x284   :  { %v647_v59 = vand.u32 4294967168, %v1710_v1 }
 0x286   :  { %1122 = vrsqrt.f32 %v647_v59  ;;  %vm686_vm12 = vcmp.eq.f32.partialorder %v647_v59, inf  ;;  %v689_v16 = vand.u32 2147483648, %v647_v59  ;;  %vm688_vm13 = vcmp.eq.f32.partialorder %v647_v59, 0.0 }
 0x28b   :  { %v1713_v8 = vpop.xlane.xlu2 %631  ;;  %v1715_v17 = vpop.xlane.xlu0 %625 }
 0x28c   :  { %v1123_v9 = vpop.eup %1122  ;;  %v1718_v6 = vand.u32 4294967168, %v1713_v8  ;;  %v1721_v18 = vand.u32 4294967168, %v1715_v17 }
 0x28d   :  { %v680_v53 = vmul.f32 %v1123_v9, %v647_v59 }
 0x28e   :  { %1124 = vrsqrt.f32 %v1718_v6  ;;  %vm698_vm7 = vcmp.eq.f32.partialorder %v1718_v6, inf  ;;  %vm700_vm15 = vcmp.eq.f32.partialorder %v1718_v6, 0.0  ;;  %v701_v54 = vand.u32 2147483648, %v1718_v6 }
 0x28f   :  { %v681_v14 = vmul.f32 %v1123_v9, %v680_v53  ;;  %1126 = vrsqrt.f32 %v1721_v18  ;;  %vm662_vm1 = vcmp.eq.f32.partialorder %v1721_v18, inf  ;;  %v665_v57 = vand.u32 2147483648, %v1721_v18 }
 0x290   :  { %vm664_vm8 = vcmp.eq.f32.partialorder %v1721_v18, 0.0 }
 0x291   :  { %v682_v19 = vmul.f32 0.5, %v681_v14 }
 0x293   :  { %v683_v36 = vsub.f32 1.5, %v682_v19  ;;  %v1726_v23 = vpop.xlane.xlu2 %627 }
 0x294   :  { %v1125_v35 = vpop.eup %1124  ;;  %v1730_v10 = vand.u32 4294967168, %v1726_v23 }
 0x295   :  { %v1127_v11 = vpop.eup %1126  ;;  %v684_v22 = vmul.f32 %v1123_v9, %v683_v36  ;;  %v692_v37 = vmul.f32 %v1125_v35, %v1718_v6 }
 0x296   :  { %v656_v13 = vmul.f32 %v1127_v11, %v1721_v18  ;;  %1128 = vrsqrt.f32 %v1730_v10  ;;  %v1733_v38 = vpop.xlane.xlu1 %633  ;;  %vm674_vm0 = vcmp.eq.f32.partialorder %v1730_v10, inf  ;;  %vm676_vm2 = vcmp.eq.f32.partialorder %v1730_v10, 0.0 }
 0x297   :  { %v685_v63 = vmul.f32 %v684_v22, %v647_v59  ;;  %v693_v24 = vmul.f32 %v1125_v35, %v692_v37  ;;  %v1736_v28 = vand.u32 4294967168, %v1733_v38  ;;  %v642_v22 = vand.u32 127, %v1710_v1 }
 0x298   :  { %v657_v41 = vmul.f32 %v1127_v11, %v656_v13  ;;  %v677_v1 = vand.u32 2147483648, %v1730_v10 }
 0x299   :  { %v694_v5 = vmul.f32 0.5, %v693_v24  ;;  %v687_v39 = vsel %vm686_vm12, %v647_v59, %v685_v63  ;;  %1130 = vrsqrt.f32 %v1736_v28  ;;  %v1770_v63 = vadd.f32 %v1633_v4, %v1620_v15 }
 0x29a   :  { %v658_v29 = vmul.f32 0.5, %v657_v41  ;;  %v690_v47 = vsel %vm688_vm13, %v689_v16, %v687_v39  ;;  %v643_v24 = vand.u32 127, %v1713_v8  ;;  %vm710_vm3 = vcmp.eq.f32.partialorder %v1736_v28, inf }
 0x29b   :  { %v695_v46 = vsub.f32 1.5, %v694_v5  ;;  %v1738_v42 = vadd.f32 1e-08, %v690_v47  ;;  %vm1781_vm5 = vcmp.eq.s32.totalorder %v1281_v3, %v642_v22  ;;  %vm712_vm4 = vcmp.eq.f32.partialorder %v1736_v28, 0.0 }
 0x29c   :  { %v659_v26 = vsub.f32 1.5, %v658_v29  ;;  %v1129_v49 = vpop.eup %1128  ;;  %v713_v47 = vand.u32 2147483648, %v1736_v28  ;;  %vm1808_vm13 = vcmp.eq.s32.totalorder %v1281_v3, %v643_v24 }
 0x29d   :  { %v696_v31 = vmul.f32 %v1125_v35, %v695_v46  ;;  %1132 = vrcp.f32 %v1738_v42  ;;  %v668_v48 = vmul.f32 %v1129_v49, %v1730_v10  ;;  %v761_v41 = vand.u32 2147483648, %v1738_v42 }
 0x29e   :  { %v660_v60 = vmul.f32 %v1127_v11, %v659_v26  ;;  %vm755_vm6 = vweird.f32 %v1738_v42 }
 0x29f   :  { %v697_v51 = vmul.f32 %v696_v31, %v1718_v6  ;;  %v669_v61 = vmul.f32 %v1129_v49, %v668_v48  ;;  %v1131_v59 = vpop.eup %1130 }
 0x2a0   :  { %v661_v0 = vmul.f32 %v660_v60, %v1721_v18  ;;  %v704_v58 = vmul.f32 %v1131_v59, %v1736_v28 }
 0x2a1   :  { %v699_v43 = vsel %vm698_vm7, %v1718_v6, %v697_v51  ;;  %v670_v14 = vmul.f32 0.5, %v669_v61  ;;  %v617_v6 = vadd.f32 %v1582_v25, %v1479_v44 }
 0x2a2   :  { %v663_v40 = vsel %vm662_vm1, %v1721_v18, %v661_v0  ;;  %v702_v45 = vsel %vm700_vm15, %v701_v54, %v699_v43  ;;  %v705_v35 = vmul.f32 %v1131_v59, %v704_v58  ;;  %v1764_v18 = vadd.f32 %v1624_v2, %v1611_v34 }
 0x2a3   :  { %v1133_v9 = vpop.eup %1132  ;;  %v666_v53 = vsel %vm664_vm8, %v665_v57, %v663_v40  ;;  %v1754_v19 = vadd.f32 1e-08, %v702_v45  ;;  %v671_v11 = vsub.f32 1.5, %v670_v14  ;;  %v759_v2 = vand.u32 2147483647, %v1738_v42 }
 0x2a4   :  { %v1756_v62 = vadd.f32 1e-08, %v666_v53  ;;  %v751_v36 = vmul.f32 %v1133_v9, %v1738_v42  ;;  %v706_v37 = vmul.f32 0.5, %v705_v35  ;;  %vm756_vm9 = vweird.f32 %v1133_v9 }
 0x2a5   :  { %1134 = vrcp.f32 %v1754_v19  ;;  %v672_v12 = vmul.f32 %v1129_v49, %v671_v11  ;;  %vm757_vm10 = vmor %vm755_vm6, %vm756_vm9  ;;  %vm760_vm11 = vcmp.eq.f32.partialorder %v759_v2, 8.507059e+37  ;;  %v774_v51 = vand.u32 2147483647, %v1754_v19 }
 0x2a6   :  { %1136 = vrcp.f32 %v1756_v62  ;;  %v752_v13 = vsub.f32 1.0, %v751_v36  ;;  %v707_v44 = vsub.f32 1.5, %v706_v37  ;;  %v731_v42 = vand.u32 2147483648, %v1756_v62 }
 0x2a7   :  { %v673_v25 = vmul.f32 %v672_v12, %v1730_v10  ;;  %v776_v48 = vand.u32 2147483648, %v1754_v19  ;;  %v729_v43 = vand.u32 2147483647, %v1756_v62  ;;  %vm770_vm7 = vweird.f32 %v1754_v19 }
 0x2a8   :  { %v753_v34 = vmul.f32 %v1133_v9, %v752_v13  ;;  %v708_v8 = vmul.f32 %v1131_v59, %v707_v44  ;;  %vm725_vm15 = vweird.f32 %v1756_v62  ;;  %v732_v36 = vor.u32 1.1754944e-38, %v731_v42 }
 0x2a9   :  { %v675_v16 = vsel %vm674_vm0, %v1730_v10, %v673_v25  ;;  %v762_v10 = vor.u32 1.1754944e-38, %v761_v41  ;;  %v777_v58 = vor.u32 1.1754944e-38, %v776_v48  ;;  %vm775_vm0 = vcmp.eq.f32.partialorder %v774_v51, 8.507059e+37 }
 0x2aa   :  { %v754_v5 = vadd.f32 %v1133_v9, %v753_v34  ;;  %v678_v39 = vsel %vm676_vm2, %v677_v1, %v675_v16  ;;  %v709_v26 = vmul.f32 %v708_v8, %v1736_v28  ;;  %vm730_vm2 = vcmp.eq.f32.partialorder %v729_v43, 8.507059e+37 }
 0x2ab   :  { %v1135_v15 = vpop.eup %1134  ;;  %v1794_v31 = vadd.f32 1e-08, %v678_v39  ;;  %v640_v34 = vand.u32 127, %v1715_v17 }
 0x2ac   :  { %v1137_v27 = vpop.eup %1136  ;;  %v766_v29 = vmul.f32 %v1135_v15, %v1754_v19  ;;  %v758_v21 = vsel %vm757_vm10, %v1133_v9, %v754_v5  ;;  %vm771_vm14 = vweird.f32 %v1135_v15  ;;  %v711_v57 = vsel %vm710_vm3, %v1736_v28, %v709_v26 }
 0x2ad   :  { %v721_v46 = vmul.f32 %v1137_v27, %v1756_v62  ;;  %1138 = vrcp.f32 %v1794_v31  ;;  %v763_v0 = vsel %vm760_vm11, %v762_v10, %v758_v21  ;;  %vm726_vm12 = vweird.f32 %v1137_v27  ;;  %vm772_vm1 = vmor %vm770_vm7, %vm771_vm14 }
 0x2ae   :  { %v767_v49 = vsub.f32 1.0, %v766_v29  ;;  %v1805_v59 = vadd.f32 %v763_v0, %v617_v6  ;;  %v714_v9 = vsel %vm712_vm4, %v713_v47, %v711_v57  ;;  %vm727_vm8 = vmor %vm725_vm15, %vm726_vm12  ;;  %v802_v11 = vsel %vm1781_vm5, %v763_v0, 0.0 }
 0x2af   :  { %v722_v60 = vsub.f32 1.0, %v721_v46  ;;  %v719_v14 = vadd.f32 1e-08, %v714_v9  ;;  %v807_v13 = vadd.f32 %v802_v11, %v1595_v33  ;;  %v746_v2 = vand.u32 2147483648, %v1794_v31 }
 0x2b0   :  { %v768_v54 = vmul.f32 %v1135_v15, %v767_v49  ;;  %vm740_vm3 = vweird.f32 %v1794_v31  ;;  %vm1837_vm5 = vcmp.eq.s32.totalorder %v1281_v3, %v640_v34  ;;  %v644_v46 = vand.u32 127, %v1733_v38 }
 0x2b1   :  { %v723_v61 = vmul.f32 %v1137_v27, %v722_v60  ;;  %1140 = vrcp.f32 %v719_v14  ;;  %v747_v8 = vor.u32 1.1754944e-38, %v746_v2  ;;  %v789_v39 = vand.u32 2147483647, %v719_v14 }
 0x2b2   :  { %v769_v45 = vadd.f32 %v1135_v15, %v768_v54  ;;  %v791_v29 = vand.u32 2147483648, %v719_v14  ;;  %vm785_vm14 = vweird.f32 %v719_v14  ;;  %v619_v49 = vadd.f32 %v1698_v55, %v1688_v50 }
 0x2b3   :  { %v724_v53 = vadd.f32 %v1137_v27, %v723_v61  ;;  %v1139_v6 = vpop.eup %1138  ;;  %vm799_vm7 = vcmp.eq.s32.totalorder %v1281_v3, %v644_v46  ;;  %1142 = vrcp.f32 %v1805_v59 }
 0x2b4   :  { %v773_v35 = vsel %vm772_vm1, %v1135_v15, %v769_v45  ;;  %v736_v37 = vmul.f32 %v1139_v6, %v1794_v31  ;;  %vm741_vm9 = vweird.f32 %v1139_v6  ;;  %v744_v15 = vand.u32 2147483647, %v1794_v31 }
 0x2b5   :  { %v728_v22 = vsel %vm727_vm8, %v1137_v27, %v724_v53  ;;  %v778_v19 = vsel %vm775_vm0, %v777_v58, %v773_v35  ;;  %vm742_vm6 = vmor %vm740_vm3, %vm741_vm9  ;;  %v792_v10 = vor.u32 1.1754944e-38, %v791_v29  ;;  %vm940_vm1 = vweird.f32 %v1805_v59 }
 0x2b6   :  { %v733_v28 = vsel %vm730_vm2, %v732_v36, %v728_v22  ;;  %v803_v62 = vsel %vm1808_vm13, %v778_v19, 0.0  ;;  %v1827_v44 = vadd.f32 %v778_v19, %v1764_v18  ;;  %v737_v25 = vsub.f32 1.0, %v736_v37 }
 0x2b7   :  { %v1822_v12 = vadd.f32 %v733_v28, %v1770_v63  ;;  %v808_v24 = vadd.f32 %v803_v62, %v1639_v20  ;;  %v1141_v4 = vpop.eup %1140  ;;  %v641_v63 = vand.u32 127, %v1726_v23  ;;  %v616_v18 = vadd.f32 %v1690_v52, %v1685_v32 }
 0x2b8   :  { %v738_v41 = vmul.f32 %v1139_v6, %v737_v25  ;;  %v781_v20 = vmul.f32 %v1141_v4, %v719_v14  ;;  %v800_v16 = vsel %vm1837_vm5, %v733_v28, 0.0  ;;  %vm745_vm4 = vcmp.eq.f32.partialorder %v744_v15, 8.507059e+37 }
 0x2b9   :  { %v816_v1 = vpack.c.bf16 %v808_v24, %v807_v13  ;;  %vm796_vm10 = vcmp.eq.s32.totalorder %v1281_v3, %v641_v63  ;;  %vm786_vm11 = vweird.f32 %v1141_v4  ;;  %v805_v26 = vadd.f32 %v800_v16, %v1645_v7  ;;  %v1143_v0 = vpop.eup %1142 }
 0x2ba   :  { %v739_v33 = vadd.f32 %v1139_v6, %v738_v41  ;;  %v782_v23 = vsub.f32 1.0, %v781_v20  ;;  %vm787_vm12 = vmor %vm785_vm14, %vm786_vm11  ;;  %vm790_vm13 = vcmp.eq.f32.partialorder %v789_v39, 8.507059e+37  ;;  %1144 = vrcp.f32 %v1822_v12 }
 0x2bb   :  { %895 = vmatmul.bf16.vlgmr.msra.gmra.mxu2 %v816_v1  ;;  %1146 = vrcp.f32 %v1827_v44  ;;  %v936_v50 = vmul.f32 %v1143_v0, %v1805_v59  ;;  %vm941_vm15 = vweird.f32 %v1143_v0  ;;  %v946_v36 = vand.u32 2147483648, %v1805_v59 }
 0x2bc   :  { %v743_v5 = vsel %vm742_vm6, %v1139_v6, %v739_v33  ;;  %v783_v52 = vmul.f32 %v1141_v4, %v782_v23  ;;  %v944_v35 = vand.u32 2147483647, %v1805_v59  ;;  %vm942_vm8 = vmor %vm940_vm1, %vm941_vm15  ;;  %v916_v62 = vand.u32 2147483648, %v1822_v12 }
 0x2bd   :  { %v748_v27 = vsel %vm745_vm4, %v747_v8, %v743_v5  ;;  %v937_v54 = vsub.f32 1.0, %v936_v50  ;;  %v947_v37 = vor.u32 1.1754944e-38, %v946_v36  ;;  %vm910_vm9 = vweird.f32 %v1822_v12 }
 0x2be   :  { %v801_v47 = vsel %vm796_vm10, %v748_v27, 0.0  ;;  %v1844_v32 = vadd.f32 %v748_v27, %v616_v18  ;;  %v784_v42 = vadd.f32 %v1141_v4, %v783_v52  ;;  %vm945_vm2 = vcmp.eq.f32.partialorder %v944_v35, 8.507059e+37 }
 0x2bf   :  { %v806_v31 = vadd.f32 %v801_v47, %v1703_v30  ;;  %v938_v61 = vmul.f32 %v1143_v0, %v937_v54  ;;  %v914_v13 = vand.u32 2147483647, %v1822_v12  ;;  %vm955_vm6 = vweird.f32 %v1827_v44 }
 0x2c0   :  { %v788_v60 = vsel %vm787_vm12, %v1141_v4, %v784_v42  ;;  %v1145_v55 = vpop.eup %1144  ;;  %1148 = vrcp.f32 %v1844_v32  ;;  %v917_v4 = vor.u32 1.1754944e-38, %v916_v62  ;;  %v959_v33 = vand.u32 2147483647, %v1827_v44 }
 0x2c1   :  { %v815_v21 = vpack.c.bf16 %v806_v31, %v805_v26  ;;  %v793_v51 = vsel %vm790_vm13, %v792_v10, %v788_v60  ;;  %v1147_v3 = vpop.eup %1146  ;;  %v906_v57 = vmul.f32 %v1145_v55, %v1822_v12  ;;  %v939_v9 = vadd.f32 %v1143_v0, %v938_v61 }
 0x2c2   :  { %v804_v48 = vsel %vm799_vm7, %v793_v51, 0.0  ;;  %v1852_v38 = vadd.f32 %v793_v51, %v619_v49  ;;  %vm911_vm0 = vweird.f32 %v1145_v55  ;;  %vm956_vm5 = vweird.f32 %v1147_v3 }
 0x2c3   :  { %890 = vmatmul.bf16.vlgmr.msra.gmra.mxu1 %v815_v21  ;;  %v809_v7 = vadd.f32 %v804_v48, %v1708_v56  ;;  %v951_v56 = vmul.f32 %v1147_v3, %v1827_v44  ;;  %v907_v43 = vsub.f32 1.0, %v906_v57  ;;  %v943_v6 = vsel %vm942_vm8, %v1143_v0, %v939_v9  ;;  %vm1877_vm3 = vmor %vm910_vm9, %vm911_vm0 }
 0x2c4   :  { %1150 = vrcp.f32 %v1852_v38  ;;  %v948_v25 = vsel %vm945_vm2, %v947_v37, %v943_v6  ;;  %v961_v12 = vand.u32 2147483648, %v1827_v44  ;;  %vm915_vm4 = vcmp.eq.f32.partialorder %v914_v13, 8.507059e+37  ;;  %vm1886_vm10 = vmor %vm955_vm6, %vm956_vm5 }
 0x2c5   :  { %v817_v30 = vpack.c.bf16 %v809_v7, %v809_v7  ;;  %v952_v45 = vsub.f32 1.0, %v951_v56  ;;  %v908_v53 = vmul.f32 %v1145_v55, %v907_v43  ;;  %v931_v27 = vand.u32 2147483648, %v1844_v32 }
 0x2c6   :  { %v1863_v40 = vpop.eup %1148  ;;  %v962_v23 = vor.u32 1.1754944e-38, %v961_v12  ;;  %vm960_vm14 = vcmp.eq.f32.partialorder %v959_v33, 8.507059e+37  ;;  %vm925_vm12 = vweird.f32 %v1844_v32  ;;  %v929_v44 = vand.u32 2147483647, %v1844_v32 }
 0x2c7   :  { %900 = vmatmul.bf16.vlgmr.msra.gmra.mxu3 %v817_v30  ;;  %v921_v58 = vmul.f32 %v1863_v40, %v1844_v32  ;;  %v953_v11 = vmul.f32 %v1147_v3, %v952_v45  ;;  %v909_v22 = vadd.f32 %v1145_v55, %v908_v53  ;;  %vm926_vm11 = vweird.f32 %v1863_v40 }
 0x2c8   :  { %vm927_vm13 = vmor %vm925_vm12, %vm926_vm11  ;;  %v976_v26 = vand.u32 2147483648, %v1852_v38  ;;  %v932_v31 = vor.u32 1.1754944e-38, %v931_v27  ;;  %vm970_vm15 = vweird.f32 %v1852_v38  ;;  %v974_v42 = vand.u32 2147483647, %v1852_v38 }
 0x2c9   :  { %v922_v28 = vsub.f32 1.0, %v921_v58  ;;  %v954_v34 = vadd.f32 %v1147_v3, %v953_v11  ;;  %v913_v1 = vsel %vm1877_vm3, %v1145_v55, %v909_v22  ;;  %vm930_vm1 = vcmp.eq.f32.partialorder %v929_v44, 8.507059e+37 }
 0x2ca   :  { %v1867_v14 = vpop.eup %1150  ;;  %v918_v18 = vsel %vm915_vm4, %v917_v4, %v913_v1  ;;  %v977_v60 = vor.u32 1.1754944e-38, %v976_v26  ;;  %vm975_vm0 = vcmp.eq.f32.partialorder %v974_v42, 8.507059e+37 }
 0x2cb   :  { %v966_v19 = vmul.f32 %v1867_v14, %v1852_v38  ;;  %v923_v15 = vmul.f32 %v1863_v40, %v922_v28  ;;  %v958_v17 = vsel %vm1886_vm10, %v1147_v3, %v954_v34  ;;  %vm971_vm7 = vweird.f32 %v1867_v14 }
 0x2cc   :  { %v963_v29 = vsel %vm960_vm14, %v962_v23, %v958_v17  ;;  %vm972_vm8 = vmor %vm970_vm15, %vm971_vm7 }
 0x2cd   :  { %v967_v41 = vsub.f32 1.0, %v966_v19  ;;  %v924_v5 = vadd.f32 %v1863_v40, %v923_v15 }
 0x2cf   :  { %v968_v16 = vmul.f32 %v1867_v14, %v967_v41  ;;  %v928_v46 = vsel %vm927_vm13, %v1863_v40, %v924_v5 }
 0x2d0   :  { %v933_v21 = vsel %vm930_vm1, %v932_v31, %v928_v46 }
 0x2d1   :  { %v969_v52 = vadd.f32 %v1867_v14, %v968_v16 }
 0x2d3   :  { %v973_v10 = vsel %vm972_vm8, %v1867_v14, %v969_v52 }
 0x2d4   :  { %v978_v48 = vsel %vm975_vm0, %v977_v60, %v973_v10 }
 0x33e   :  { %v896_v24 = vpop.f32.mrf.mxu2 }
 0x33f   :  { %v982_v2 = vmul.f32 %v948_v25, %v896_v24 }
 0x340   :  { %v891_v20 = vpop.f32.mrf.mxu1 }
 0x341   :  { %987 = vst [vmem:[#allocation5 + $0x10] sm:$0xff] %v982_v2  ;;  %v980_v8 = vmul.f32 %v918_v18, %v891_v20 }
 0x343   :  { %985 = vst [vmem:[#allocation5] sm:$0xff] %v980_v8 }
 0x346   :  { %v898_v39 = vpop.f32.mrf.mxu2 }
 0x347   :  { %v983_v47 = vmul.f32 %v963_v29, %v898_v39 }
 0x348   :  { %v893_v32 = vpop.f32.mrf.mxu1 }
 0x349   :  { %988 = vst [vmem:[#allocation5 + $0x18] sm:$0xff] %v983_v47  ;;  %v981_v49 = vmul.f32 %v933_v21, %v893_v32 }
 0x34a   :  { %v901_v51 = vpop.f32.mrf.mxu3 }
 0x34b   :  { %986 = vst [vmem:[#allocation5 + $0x8] sm:$0xff] %v981_v49  ;;  %v984_v38 = vmul.f32 %v978_v48, %v901_v51 }
 0x34d   :  { %989 = vst [vmem:[#allocation5 + $0x20] sm:$0xff] %v984_v38 }
 0x34e   :  { %1002 = dma.vmem_to_hbm [thread:$0]  %s995_s1, 640, %s997_s16, [#allocation4], %s1210_s17, %s1210_s17, %s1211_s18  }
 0x352   :  { %v903_v7 = vpop.f32.mrf.mxu3 }
 0x353   :  { %1202 = dma.done.wait [#allocation4], 640  }
 0x354   :  { %1203 = vsyncadd [#allocation4], 4294966656 }
 0x355   :  { %1007 = vsyncpa [#allocation3], 1 }
 0x356   :  { %1008 = vsyncpa [#allocation4], 1 }

// kernel: tpu_custom_call.1
= control target key start
LH: loop header
LB: loop body
LE: loop exit
PB: predicated region body
PF: predicated region fallthrough
CT: control target
= control target key end

     0   :  { %10 = vsyncpa [#allocation3], 0  ;;  %s1909_s0 = inlined_call_operand.vmem [shape: f32[40,4], index: 0, kind: input, shape index: {}]   ;;  %s1910_s1 = inlined_call_operand.vmem [shape: f32[4,128], index: 1, kind: input, shape index: {}]   ;;  %s1911_s2 = inlined_call_operand.vmem [shape: f32[4,1], index: 2, kind: input, shape index: {}]   ;;  %s1912_s3 = inlined_call_operand.vmem [shape: f32[4,1], index: 3, kind: input, shape index: {}]   ;;  %s1913_s4 = inlined_call_operand.hbm [shape: bf16[128,128], index: 4, kind: input, shape index: {}]   ;;  %s1914_s5 = inlined_call_operand.hbm [shape: f32[40,128], index: 5, kind: output, shape index: {}]  }
   0x1   :  { %11 = vsyncpa [#allocation4], 0  ;;  %s24_s20 = sshll.u32 %s1913_s4, 4  ;;  %s1204_s21 = smov [#allocation2]   ;;  %s25_s20 = int_to_ptr.hbm [resolvable:$true] %s24_s20 }
   0x2   :  { %s26_s22 = sshll.u32 %s1204_s21, 4  ;;  %s1205_s23 = smov 64   ;;  %s27_s22 = int_to_ptr.vmem [resolvable:$true] %s26_s22 }
   0x3   :  { %s1206_s24 = smov 4  }
   0x4   :  { %32 = dma.hbm_to_vmem [thread:$0]  %s25_s20, 1024, %s27_s22, [#allocation3], %s1205_s23, %s1205_s23, %s1206_s24  }
   0x5   :  { %1200 = dma.done.wait [#allocation3], 1024  }
   0x6   :  { %1201 = vsyncadd [#allocation3], 4294966272  ;;  %v1207_v0 = vmov 0   ;;  %v43_v1 = vld [vmem:[%s1911_s2] sm:$0xf]  ;;  %v39_v3 = vld [vmem:[%s1909_s0 + $0x10] sm:$0xff]  ;;  %v57_v16 = vlaneseq }
   0x7   :  { %1079 = vset.pattern.permute.xlu0 %v1207_v0  ;;  %1080 = vset.pattern.permute.xlu2 %v1207_v0  ;;  %v41_v2 = vld [vmem:[%s1909_s0 + $0x20] sm:$0xff]  ;;  %v115_v5 = vmul.f32 %v39_v3, %v39_v3  ;;  %s1208_s30 = smov 127   ;;  %v40_v6 = vld [vmem:[%s1909_s0 + $0x18] sm:$0xff]  ;;  %v38_v11 = vld [vmem:[%s1909_s0 + $0x8] sm:$0xff]  ;;  %vm138_vm0 = vcmask 23552   ;;  %vm77_vm2 = vcmask 1043456  }
   0x8   :  { %1081 = vset.pattern.permute.xlu1 %v1207_v0  ;;  %46 = vperm.xlu0 %1079, %v43_v1   ;;  %v117_v4 = vmul.f32 %v41_v2, %v41_v2  ;;  %v37_v7 = vld [vmem:[%s1909_s0] sm:$0xff]  ;;  %v116_v9 = vmul.f32 %v40_v6, %v40_v6  ;;  %v114_v12 = vmul.f32 %v38_v11, %v38_v11  ;;  %v58_v20 = vshrl.u32 %v57_v16, 7  ;;  %s1209_s0 = smov [#allocation5]   ;;  %s996_s16 = sshll.u32 %s1914_s5, 4  ;;  %s997_s16 = int_to_ptr.hbm [resolvable:$true] %s996_s16 }
   0x9   :  { %127 = vrot.lane.b32.xlu1 %v115_v5, %s1208_s30  ;;  %v50_v8 = vld [vmem:[%s1912_s3] sm:$0xf]  ;;  %v113_v10 = vmul.f32 %v37_v7, %v37_v7  ;;  %vm61_vm3 = vcmask 31744   ;;  %s1210_s17 = smov 128   ;;  %s1211_s18 = smov 8  }
   0xa   :  { %131 = vrot.lane.b32.xlu2 %v117_v4, %s1208_s30  ;;  %v42_v19 = vld [vmem:[%s1910_s1] sm:$0xf]  ;;  %vm59_vm1 = vcmp.eq.s32.totalorder %v58_v20, 0  ;;  %s994_s1 = sshll.u32 %s1209_s0, 4  ;;  %s995_s1 = int_to_ptr.vmem [resolvable:$true] %s994_s1 }
  0x10   :  { %53 = vperm.xlu0 %1079, %v50_v8  }
  0x11   :  { %129 = vrot.lane.b32.xlu1 %v116_v9, %s1208_s30 }
  0x12   :  { %123 = vrot.lane.b32.xlu2 %v113_v10, %s1208_s30 }
  0x18   :  { %125 = vrot.lane.b32.xlu0 %v114_v12, %s1208_s30 }
  0x1a   :  { %186 = vperm.xlu2 %1080, %v39_v3  }
  0x20   :  { %190 = vperm.xlu0 %1079, %v40_v6  }
  0x64   :  { %v132_v13 = vpop.permute.xlu2 %131 }
  0x65   :  { %v151_v14 = vsel %vm138_vm0, %v132_v13, 0.0 }
  0x66   :  { %152 = vadd.xlane.f32.xlu0 %v151_v14 }
  0x6c   :  { %v124_v29 = vpop.permute.xlu2 %123 }
  0x6d   :  { %v139_v32 = vsel %vm138_vm0, %v124_v29, 0.0 }
  0x74   :  { %v187_v34 = vpop.permute.xlu2 %186 }
  0x7a   :  { %v47_v15 = vpop.permute.xlu0 %46  ;;  %178 = vperm.xlu0 %1079, %v37_v7  }
  0x7b   :  { %v128_v17 = vpop.permute.xlu1 %127  ;;  %v49_v21 = vmul.f32 %v47_v15, %v42_v19 }
  0x7c   :  { %v145_v18 = vsel %vm138_vm0, %v128_v17, 0.0 }
  0x7d   :  { %146 = vadd.xlane.f32.xlu1 %v145_v18 }
  0x82   :  { %v54_v22 = vpop.permute.xlu0 %53 }
  0x83   :  { %v56_v23 = vadd.f32 %v54_v22, %v49_v21  ;;  %v130_v24 = vpop.permute.xlu1 %129 }
  0x84   :  { %v148_v26 = vsel %vm138_vm0, %v130_v24, 0.0 }
  0x85   :  { %v60_v25 = vsel %vm59_vm1, 0.0, %v56_v23  ;;  %149 = vadd.xlane.f32.xlu2 %v148_v26  ;;  %v197_v50 = vperm.slane %v56_v23, 0 }
  0x86   :  { %1009 = vmatpush.msk.msra.mxu0 %vm77_vm2, %v60_v25  ;;  %v154_v27 = vmul.f32 %v60_v25, %v60_v25 }
  0x87   :  { %1010 = vmatmul.msk.f32.vlgmr.msra.gmra.mxu0 %vm61_vm3, %v37_v7  ;;  %vm200_vm6 = vcmp.eq.f32.partialorder %v187_v34, %v197_v50 }
  0x88   :  { %v155_v28 = vsel %vm77_vm2, %v154_v27, 0.0 }
  0x89   :  { %v156_v33 = vrot.slane %v155_v28, 4 }
  0x8a   :  { %v126_v30 = vpop.permute.xlu0 %125 }
  0x8b   :  { %v142_v31 = vsel %vm138_vm0, %v126_v30, 0.0  ;;  %v157_v35 = vadd.f32 %v156_v33, %v155_v28 }
  0x8c   :  { %143 = vadd.xlane.f32.xlu1 %v142_v31 }
  0x8d   :  { %140 = vadd.xlane.f32.xlu2 %v139_v32  ;;  %v158_v36 = vrot.slane %v157_v35, 2 }
  0x8f   :  { %1011 = vmatmul.msk.f32.gmra.mxu0 %vm61_vm3, %v38_v11  ;;  %v159_v39 = vadd.f32 %v158_v36, %v157_v35 }
  0x91   :  { %v160_v40 = vrot.slane %v159_v39, 1 }
  0x92   :  { %v191_v37 = vpop.permute.xlu0 %190 }
  0x93   :  { %v161_v44 = vadd.f32 %v160_v40, %v159_v39  ;;  %vm201_vm7 = vcmp.eq.f32.partialorder %v191_v37, %v197_v50 }
  0x97   :  { %1012 = vmatmul.msk.f32.gmra.mxu0 %vm61_vm3, %v39_v3  ;;  %v1281_v3 = vand.u32 127, %v57_v16 }
  0x9f   :  { %1013 = vmatmul.msk.f32.gmra.mxu0 %vm61_vm3, %v40_v6 }
  0xa5   :  { %194 = vperm.xlu1 %1081, %v41_v2   ;;  %182 = vperm.xlu2 %1080, %v38_v11  }
  0xa7   :  { %1014 = vmatmul.msk.f32.gmra.mxu0 %vm61_vm3, %v41_v2 }
  0xd9   :  { %v153_v41 = vpop.xlane.xlu0 %152 }
  0xda   :  { %v166_v15 = vadd.f32 %v161_v44, %v153_v41 }
  0xec   :  { %v179_v48 = vpop.permute.xlu0 %178 }
  0xed   :  { %vm198_vm4 = vcmp.eq.f32.partialorder %v179_v48, %v197_v50 }
  0xf0   :  { %v147_v42 = vpop.xlane.xlu1 %146 }
  0xf1   :  { %v164_v62 = vadd.f32 %v161_v44, %v147_v42 }
  0xf8   :  { %v150_v38 = vpop.xlane.xlu2 %149 }
  0xf9   :  { %v165_v6 = vadd.f32 %v161_v44, %v150_v38 }
  0xff   :  { %v144_v52 = vpop.xlane.xlu1 %143 }
 0x100   :  { %v141_v43 = vpop.xlane.xlu2 %140  ;;  %v163_v55 = vadd.f32 %v161_v44, %v144_v52 }
 0x101   :  { %v162_v46 = vadd.f32 %v161_v44, %v141_v43  ;;  %v1054_v43 = vld [vmem:[#allocation2 + $0x38] sm:$0xff] }
 0x102   :  { %1055 = vmatpush.bf16.msra.mxu2 %v1054_v43  ;;  %882 = vmatpush.bf16.msra.mxu1 %v1054_v43 }
 0x103   :  { %1056 = vmatpush.bf16.msra.mxu3 %v1054_v43 }
 0x104   :  { %v98_v45 = vpop.f32.mrf.mxu0 }
 0x105   :  { %v167_v47 = vmul.f32 2.0, %v98_v45  ;;  %v1052_v45 = vld [vmem:[#allocation2 + $0x28] sm:$0xff] }
 0x107   :  { %v172_v49 = vsub.f32 %v162_v46, %v167_v47 }
 0x108   :  { %v183_v57 = vpop.permute.xlu2 %182 }
 0x109   :  { %v203_v51 = vmax.f32 %v172_v49, 0.0  ;;  %vm199_vm5 = vcmp.eq.f32.partialorder %v183_v57, %v197_v50 }
 0x10b   :  { %v208_v53 = vsel %vm198_vm4, %v203_v51, 1e+30 }
 0x10c   :  { %v101_v54 = vpop.f32.mrf.mxu0  ;;  %v220_v11 = vand.u32 4294967168, %v208_v53 }
 0x10d   :  { %v168_v56 = vmul.f32 2.0, %v101_v54 }
 0x10e   :  { %v225_v18 = vor.u32 %v220_v11, %v1281_v3 }
 0x10f   :  { %v173_v58 = vsub.f32 %v163_v55, %v168_v56 }
 0x111   :  { %v204_v59 = vmax.f32 %v173_v58, 0.0 }
 0x113   :  { %v209_v60 = vsel %vm199_vm5, %v204_v59, 1e+30 }
 0x114   :  { %v104_v61 = vpop.f32.mrf.mxu0  ;;  %v221_v22 = vand.u32 4294967168, %v209_v60 }
 0x115   :  { %v169_v63 = vmul.f32 2.0, %v104_v61 }
 0x116   :  { %v226_v25 = vor.u32 %v221_v22, %v1281_v3 }
 0x117   :  { %v174_v0 = vsub.f32 %v164_v62, %v169_v63  ;;  %v195_v19 = vpop.permute.xlu1 %194 }
 0x118   :  { %vm202_vm8 = vcmp.eq.f32.partialorder %v195_v19, %v197_v50 }
 0x119   :  { %v205_v1 = vmax.f32 %v174_v0, 0.0 }
 0x11b   :  { %v210_v2 = vsel %vm200_vm6, %v205_v1, 1e+30 }
 0x11c   :  { %v107_v4 = vpop.f32.mrf.mxu0  ;;  %v222_v5 = vand.u32 4294967168, %v210_v2 }
 0x11d   :  { %v170_v7 = vmul.f32 2.0, %v107_v4 }
 0x11e   :  { %v227_v8 = vor.u32 %v222_v5, %v1281_v3 }
 0x11f   :  { %v175_v9 = vsub.f32 %v165_v6, %v170_v7 }
 0x120   :  { %239 = vmin.xlane.f32.xlu1 %v227_v8 }
 0x121   :  { %v206_v10 = vmax.f32 %v175_v9, 0.0 }
 0x123   :  { %v211_v12 = vsel %vm201_vm7, %v206_v10, 1e+30 }
 0x124   :  { %v110_v13 = vpop.f32.mrf.mxu0  ;;  %v223_v14 = vand.u32 4294967168, %v211_v12 }
 0x125   :  { %v171_v17 = vmul.f32 2.0, %v110_v13 }
 0x126   :  { %v228_v16 = vor.u32 %v223_v14, %v1281_v3 }
 0x127   :  { %v176_v20 = vsub.f32 %v166_v15, %v171_v17 }
 0x128   :  { %235 = vmin.xlane.f32.xlu1 %v225_v18  ;;  %241 = vmin.xlane.f32.xlu0 %v228_v16 }
 0x129   :  { %v207_v21 = vmax.f32 %v176_v20, 0.0 }
 0x12b   :  { %v212_v23 = vsel %vm202_vm8, %v207_v21, 1e+30 }
 0x12c   :  { %v224_v24 = vand.u32 4294967168, %v212_v23 }
 0x12e   :  { %v229_v26 = vor.u32 %v224_v24, %v1281_v3 }
 0x130   :  { %237 = vmin.xlane.f32.xlu0 %v226_v25  ;;  %243 = vmin.xlane.f32.xlu2 %v229_v26 }
 0x193   :  { %v240_v27 = vpop.xlane.xlu1 %239 }
 0x194   :  { %v252_v28 = vand.u32 127, %v240_v27  ;;  %v257_v47 = vand.u32 4294967168, %v240_v27 }
 0x196   :  { %vm1289_vm9 = vcmp.eq.s32.totalorder %v1281_v3, %v252_v28  ;;  %1082 = vrsqrt.f32 %v257_v47  ;;  %vm296_vm14 = vcmp.eq.f32.partialorder %v257_v47, inf  ;;  %v299_v5 = vand.u32 2147483648, %v257_v47 }
 0x197   :  { %v1295_v30 = vsel %vm1289_vm9, 2e+30, %v227_v8  ;;  %vm298_vm15 = vcmp.eq.f32.partialorder %v257_v47, 0.0 }
 0x198   :  { %434 = vmin.xlane.f32.xlu2 %v1295_v30 }
 0x19b   :  { %v236_v31 = vpop.xlane.xlu1 %235  ;;  %v242_v32 = vpop.xlane.xlu0 %241 }
 0x19c   :  { %v250_v33 = vand.u32 127, %v236_v31  ;;  %v253_v34 = vand.u32 127, %v242_v32  ;;  %v1083_v48 = vpop.eup %1082  ;;  %v258_v50 = vand.u32 4294967168, %v242_v32  ;;  %v255_v51 = vand.u32 4294967168, %v236_v31 }
 0x19d   :  { %v290_v49 = vmul.f32 %v1083_v48, %v257_v47 }
 0x19e   :  { %vm1299_vm10 = vcmp.eq.s32.totalorder %v1281_v3, %v253_v34  ;;  %vm1308_vm11 = vcmp.eq.s32.totalorder %v1281_v3, %v250_v33  ;;  %1084 = vrsqrt.f32 %v258_v50  ;;  %vm308_vm0 = vcmp.eq.f32.partialorder %v258_v50, inf }
 0x19f   :  { %v1305_v36 = vsel %vm1299_vm10, 2e+30, %v228_v16  ;;  %v1315_v38 = vsel %vm1308_vm11, 2e+30, %v225_v18  ;;  %v291_v52 = vmul.f32 %v1083_v48, %v290_v49  ;;  %1086 = vrsqrt.f32 %v255_v51 }
 0x1a0   :  { %436 = vmin.xlane.f32.xlu1 %v1305_v36  ;;  %430 = vmin.xlane.f32.xlu2 %v1315_v38  ;;  %vm272_vm1 = vcmp.eq.f32.partialorder %v255_v51, inf  ;;  %v311_v22 = vand.u32 2147483648, %v258_v50  ;;  %vm310_vm2 = vcmp.eq.f32.partialorder %v258_v50, 0.0  ;;  %vm274_vm3 = vcmp.eq.f32.partialorder %v255_v51, 0.0 }
 0x1a1   :  { %v292_v53 = vmul.f32 0.5, %v291_v52 }
 0x1a3   :  { %v238_v39 = vpop.xlane.xlu0 %237  ;;  %v244_v40 = vpop.xlane.xlu2 %243  ;;  %v293_v55 = vsub.f32 1.5, %v292_v53 }
 0x1a4   :  { %v251_v41 = vand.u32 127, %v238_v39  ;;  %v254_v42 = vand.u32 127, %v244_v40  ;;  %v1085_v54 = vpop.eup %1084  ;;  %v1338_v60 = vand.u32 4294967168, %v238_v39  ;;  %v1340_v62 = vand.u32 4294967168, %v244_v40 }
 0x1a5   :  { %v1087_v56 = vpop.eup %1086  ;;  %v302_v57 = vmul.f32 %v1085_v54, %v258_v50  ;;  %v294_v58 = vmul.f32 %v1083_v48, %v293_v55 }
 0x1a6   :  { %vm1319_vm12 = vcmp.eq.s32.totalorder %v1281_v3, %v251_v41  ;;  %vm1329_vm13 = vcmp.eq.s32.totalorder %v1281_v3, %v254_v42  ;;  %v266_v59 = vmul.f32 %v1087_v56, %v255_v51  ;;  %1088 = vrsqrt.f32 %v1338_v60 }
 0x1a7   :  { %v1325_v44 = vsel %vm1319_vm12, 2e+30, %v226_v25  ;;  %v1335_v46 = vsel %vm1329_vm13, 2e+30, %v229_v26  ;;  %v303_v61 = vmul.f32 %v1085_v54, %v302_v57  ;;  %v295_v63 = vmul.f32 %v294_v58, %v257_v47 }
 0x1a8   :  { %432 = vmin.xlane.f32.xlu1 %v1325_v44  ;;  %438 = vmin.xlane.f32.xlu0 %v1335_v46  ;;  %v267_v0 = vmul.f32 %v1087_v56, %v266_v59  ;;  %1090 = vrsqrt.f32 %v1340_v62  ;;  %v275_v26 = vand.u32 2147483648, %v255_v51  ;;  %vm284_vm5 = vcmp.eq.f32.partialorder %v1338_v60, inf }
 0x1a9   :  { %v304_v1 = vmul.f32 0.5, %v303_v61  ;;  %v297_v2 = vsel %vm296_vm14, %v257_v47, %v295_v63  ;;  %vm286_vm6 = vcmp.eq.f32.partialorder %v1338_v60, 0.0  ;;  %v287_v53 = vand.u32 2147483648, %v1338_v60 }
 0x1aa   :  { %v268_v4 = vmul.f32 0.5, %v267_v0  ;;  %v300_v6 = vsel %vm298_vm15, %v299_v5, %v297_v2  ;;  %vm320_vm7 = vcmp.eq.f32.partialorder %v1340_v62, inf }
 0x1ab   :  { %v305_v7 = vsub.f32 1.5, %v304_v1  ;;  %v1344_v11 = vadd.f32 1e-08, %v300_v6 }
 0x1ac   :  { %v1089_v8 = vpop.eup %1088  ;;  %v269_v9 = vsub.f32 1.5, %v268_v4 }
 0x1ad   :  { %v306_v12 = vmul.f32 %v1085_v54, %v305_v7  ;;  %v278_v14 = vmul.f32 %v1089_v8, %v1338_v60  ;;  %1092 = vrcp.f32 %v1344_v11  ;;  %v369_v1 = vand.u32 2147483647, %v1344_v11 }
 0x1ae   :  { %v1091_v10 = vpop.eup %1090  ;;  %v270_v13 = vmul.f32 %v1087_v56, %v269_v9  ;;  %v371_v2 = vand.u32 2147483648, %v1344_v11 }
 0x1af   :  { %v314_v15 = vmul.f32 %v1091_v10, %v1340_v62  ;;  %v307_v17 = vmul.f32 %v306_v12, %v258_v50  ;;  %v279_v16 = vmul.f32 %v1089_v8, %v278_v14  ;;  %v323_v14 = vand.u32 2147483648, %v1340_v62 }
 0x1b0   :  { %v271_v18 = vmul.f32 %v270_v13, %v255_v51 }
 0x1b1   :  { %v315_v19 = vmul.f32 %v1091_v10, %v314_v15  ;;  %v309_v20 = vsel %vm308_vm0, %v258_v50, %v307_v17  ;;  %v280_v24 = vmul.f32 0.5, %v279_v16  ;;  %vm322_vm0 = vcmp.eq.f32.partialorder %v1340_v62, 0.0 }
 0x1b2   :  { %v273_v23 = vsel %vm272_vm1, %v255_v51, %v271_v18  ;;  %v312_v27 = vsel %vm310_vm2, %v311_v22, %v309_v20  ;;  %vm365_vm1 = vweird.f32 %v1344_v11 }
 0x1b3   :  { %v1349_v21 = vpop.eup %1092  ;;  %v316_v25 = vmul.f32 0.5, %v315_v19  ;;  %v276_v31 = vsel %vm274_vm3, %v275_v26, %v273_v23  ;;  %v281_v33 = vsub.f32 1.5, %v280_v24  ;;  %v1355_v41 = vadd.f32 1e-08, %v312_v27 }
 0x1b4   :  { %v361_v28 = vmul.f32 %v1349_v21, %v1344_v11  ;;  %v1358_v47 = vadd.f32 1e-08, %v276_v31  ;;  %vm366_vm8 = vweird.f32 %v1349_v21  ;;  %vm1433_vm3 = vcmp.eq.f32.partialorder %v369_v1, 8.507059e+37 }
 0x1b5   :  { %v317_v34 = vsub.f32 1.5, %v316_v25  ;;  %v282_v49 = vmul.f32 %v1089_v8, %v281_v33  ;;  %v384_v16 = vand.u32 2147483647, %v1355_v41  ;;  %vm1422_vm2 = vmor %vm365_vm1, %vm366_vm8 }
 0x1b6   :  { %v362_v42 = vsub.f32 1.0, %v361_v28  ;;  %v339_v26 = vand.u32 2147483647, %v1358_v47 }
 0x1b7   :  { %v318_v50 = vmul.f32 %v1091_v10, %v317_v34  ;;  %v283_v56 = vmul.f32 %v282_v49, %v1338_v60 }
 0x1b8   :  { %v363_v52 = vmul.f32 %v1349_v21, %v362_v42 }
 0x1b9   :  { %v319_v57 = vmul.f32 %v318_v50, %v1340_v62  ;;  %v285_v8 = vsel %vm284_vm5, %v1338_v60, %v283_v56  ;;  %v341_v60 = vand.u32 2147483648, %v1358_v47 }
 0x1ba   :  { %v1389_v5 = vadd.f32 %v1349_v21, %v363_v52 }
 0x1bb   :  { %v321_v9 = vsel %vm320_vm7, %v1340_v62, %v319_v57  ;;  %v386_v62 = vand.u32 2147483648, %v1355_v41 }
 0x1bc   :  { %v324_v20 = vsel %vm322_vm0, %v323_v14, %v321_v9  ;;  %v368_v23 = vsel %vm1422_vm2, %v1349_v21, %v1389_v5  ;;  %v1938_v9 = vmov 0  ;;  %v1483_v14 = vor.u32 1.1754944e-38, %v341_v60 }
 0x1bd   :  { %v1446_v42 = vadd.f32 1e-08, %v324_v20 }
 0x20b   :  { %v435_v32 = vpop.xlane.xlu2 %434 }
 0x20c   :  { %v447_v39 = vand.u32 127, %v435_v32  ;;  %v1353_v40 = vand.u32 4294967168, %v435_v32 }
 0x20e   :  { %1094 = vrsqrt.f32 %v1353_v40  ;;  %vm1361_vm4 = vcmp.eq.s32.totalorder %v1281_v3, %v447_v39  ;;  %vm491_vm5 = vcmp.eq.f32.partialorder %v1353_v40, inf }
 0x20f   :  { %v622_v51 = vsel %vm1361_vm4, 2e+30, %v1295_v30  ;;  %1096 = vrcp.f32 %v1355_v41 }
 0x210   :  { %629 = vmin.xlane.f32.xlu0 %v622_v51  ;;  %1098 = vrcp.f32 %v1358_v47 }
 0x213   :  { %v437_v54 = vpop.xlane.xlu1 %436  ;;  %v431_v59 = vpop.xlane.xlu2 %430 }
 0x214   :  { %v1095_v55 = vpop.eup %1094  ;;  %v448_v30 = vand.u32 127, %v437_v54  ;;  %v1376_v58 = vand.u32 4294967168, %v437_v54  ;;  %v445_v63 = vand.u32 127, %v431_v59  ;;  %v1380_v0 = vand.u32 4294967168, %v431_v59 }
 0x215   :  { %v485_v61 = vmul.f32 %v1095_v55, %v1353_v40  ;;  %v1386_v4 = vpop.eup %1096 }
 0x216   :  { %1100 = vrsqrt.f32 %v1376_v58  ;;  %vm1393_vm14 = vcmp.eq.s32.totalorder %v1281_v3, %v448_v30  ;;  %vm1405_vm15 = vcmp.eq.s32.totalorder %v1281_v3, %v445_v63  ;;  %v1409_v13 = vpop.eup %1098  ;;  %v376_v18 = vmul.f32 %v1386_v4, %v1355_v41 }
 0x217   :  { %v486_v6 = vmul.f32 %v1095_v55, %v485_v61  ;;  %1102 = vrsqrt.f32 %v1380_v0  ;;  %v623_v10 = vsel %vm1393_vm14, 2e+30, %v1305_v36  ;;  %v620_v17 = vsel %vm1405_vm15, 2e+30, %v1315_v38 }
 0x218   :  { %631 = vmin.xlane.f32.xlu2 %v623_v10  ;;  %v372_v36 = vor.u32 1.1754944e-38, %v371_v2  ;;  %625 = vmin.xlane.f32.xlu0 %v620_v17  ;;  %v288_v38 = vsel %vm286_vm6, %v287_v53, %v285_v8  ;;  %v331_v25 = vmul.f32 %v1409_v13, %v1358_v47  ;;  %v377_v21 = vsub.f32 1.0, %v376_v18 }
 0x219   :  { %v487_v15 = vmul.f32 0.5, %v486_v6  ;;  %v1444_v39 = vadd.f32 1e-08, %v288_v38  ;;  %v494_v53 = vand.u32 2147483648, %v1353_v40  ;;  %vm493_vm6 = vcmp.eq.f32.partialorder %v1353_v40, 0.0 }
 0x21a   :  { %v332_v2 = vsub.f32 1.0, %v331_v25  ;;  %v1469_v6 = vor.u32 1.1754944e-38, %v386_v62  ;;  %vm381_vm1 = vweird.f32 %v1386_v4  ;;  %v378_v62 = vmul.f32 %v1386_v4, %v377_v21 }
 0x21b   :  { %v488_v11 = vsub.f32 1.5, %v487_v15  ;;  %v433_v27 = vpop.xlane.xlu1 %432  ;;  %v439_v50 = vpop.xlane.xlu0 %438  ;;  %vm467_vm0 = vcmp.eq.f32.partialorder %v1380_v0, inf  ;;  %v470_v24 = vand.u32 2147483648, %v1380_v0  ;;  %vm469_vm2 = vcmp.eq.f32.partialorder %v1380_v0, 0.0 }
 0x21c   :  { %v1101_v22 = vpop.eup %1100  ;;  %v446_v33 = vand.u32 127, %v433_v27  ;;  %v1442_v34 = vand.u32 4294967168, %v433_v27  ;;  %v1453_v56 = vand.u32 4294967168, %v439_v50  ;;  %v356_v29 = vand.u32 2147483648, %v1444_v39 }
 0x21d   :  { %v1103_v28 = vpop.eup %1102  ;;  %v489_v31 = vmul.f32 %v1095_v55, %v488_v11  ;;  %v497_v32 = vmul.f32 %v1101_v22, %v1376_v58  ;;  %v449_v55 = vand.u32 127, %v439_v50 }
 0x21e   :  { %v461_v49 = vmul.f32 %v1103_v28, %v1380_v0  ;;  %1104 = vrsqrt.f32 %v1442_v34  ;;  %vm1458_vm7 = vcmp.eq.s32.totalorder %v1281_v3, %v446_v33  ;;  %v1510_v33 = vadd.f32 %v1386_v4, %v378_v62 }
 0x21f   :  { %v490_v51 = vmul.f32 %v489_v31, %v1353_v40  ;;  %v498_v52 = vmul.f32 %v1101_v22, %v497_v32  ;;  %1106 = vrsqrt.f32 %v1453_v56  ;;  %v621_v1 = vsel %vm1458_vm7, 2e+30, %v1325_v44 }
 0x220   :  { %v462_v54 = vmul.f32 %v1103_v28, %v461_v49  ;;  %1108 = vrcp.f32 %v1444_v39  ;;  %627 = vmin.xlane.f32.xlu2 %v621_v1  ;;  %vm1473_vm8 = vcmp.eq.s32.totalorder %v1281_v3, %v449_v55  ;;  %v1479_v44 = vsel %vm1433_vm3, %v372_v36, %v368_v23 }
 0x221   :  { %v492_v57 = vsel %vm491_vm5, %v1353_v40, %v490_v51  ;;  %v499_v30 = vmul.f32 0.5, %v498_v52  ;;  %1110 = vrcp.f32 %v1446_v42  ;;  %v1939_v9 = vsel %vm1473_vm8, 4294967295, %v1938_v9 }
 0x222   :  { %v495_v61 = vsel %vm493_vm6, %v494_v53, %v492_v57  ;;  %v463_v63 = vmul.f32 0.5, %v462_v54  ;;  %v624_v19 = vsel %vm1473_vm8, 2e+30, %v1335_v46  ;;  %v333_v36 = vmul.f32 %v1409_v13, %v332_v2 }
 0x223   :  { %v1467_v5 = vadd.f32 1e-08, %v495_v61  ;;  %v500_v40 = vsub.f32 1.5, %v499_v30  ;;  %vm336_vm3 = vweird.f32 %v1409_v13  ;;  %vm503_vm5 = vcmp.eq.f32.partialorder %v1376_v58, inf  ;;  %633 = vmin.xlane.f32.xlu1 %v624_v19 }
 0x224   :  { %v464_v8 = vsub.f32 1.5, %v463_v63  ;;  %v1105_v10 = vpop.eup %1104  ;;  %vm505_vm6 = vcmp.eq.f32.partialorder %v1376_v58, 0.0  ;;  %v506_v23 = vand.u32 2147483648, %v1376_v58  ;;  %v1513_v51 = vadd.f32 %v1409_v13, %v333_v36 }
 0x225   :  { %1112 = vrcp.f32 %v1467_v5  ;;  %v501_v15 = vmul.f32 %v1101_v22, %v500_v40  ;;  %v473_v18 = vmul.f32 %v1105_v10, %v1442_v34  ;;  %v1107_v38 = vpop.eup %1106  ;;  %v412_v30 = vsel %vm1289_vm9, %v1479_v44, 0.0 }
 0x226   :  { %v465_v17 = vmul.f32 %v1103_v28, %v464_v8  ;;  %v1498_v46 = vpop.eup %1108  ;;  %v509_v25 = vmul.f32 %v1107_v38, %v1453_v56  ;;  %v354_v63 = vand.u32 2147483647, %v1444_v39  ;;  %v566_v40 = vand.u32 2147483648, %v1467_v5 }
 0x227   :  { %v502_v20 = vmul.f32 %v501_v15, %v1376_v58  ;;  %v474_v22 = vmul.f32 %v1105_v10, %v473_v18  ;;  %v1504_v60 = vpop.eup %1110  ;;  %vm1943_vm9 = vweird.f32 %v1358_v47 }
 0x228   :  { %v466_v11 = vmul.f32 %v465_v17, %v1380_v0  ;;  %v510_v50 = vmul.f32 %v1107_v38, %v509_v25  ;;  %v1526_v54 = vmul.f32 %v1504_v60, %v1446_v42  ;;  %v564_v17 = vand.u32 2147483647, %v1467_v5 }
 0x229   :  { %v504_v27 = vsel %vm503_vm5, %v1376_v58, %v502_v20  ;;  %v475_v31 = vmul.f32 0.5, %v474_v22 }
 0x22a   :  { %v468_v28 = vsel %vm467_vm0, %v1380_v0, %v466_v11  ;;  %v507_v21 = vsel %vm505_vm6, %v506_v23, %v504_v27  ;;  %v1522_v0 = vmul.f32 %v1498_v46, %v1444_v39  ;;  %v511_v57 = vmul.f32 0.5, %v510_v50 }
 0x22b   :  { %v1113_v32 = vpop.eup %1112  ;;  %v471_v49 = vsel %vm469_vm2, %v470_v24, %v468_v28  ;;  %v1516_v53 = vadd.f32 1e-08, %v507_v21  ;;  %v476_v55 = vsub.f32 1.5, %v475_v31  ;;  %vm1940_vm0 = vweird.f32 %v1355_v41 }
 0x22c   :  { %v556_v52 = vmul.f32 %v1113_v32, %v1467_v5  ;;  %v1518_v58 = vadd.f32 1e-08, %v471_v49  ;;  %vm1535_vm2 = vmor %vm1940_vm0, %vm381_vm1  ;;  %vm561_vm5 = vweird.f32 %v1113_v32  ;;  %v512_v18 = vsub.f32 1.5, %v511_v57 }
 0x22d   :  { %1114 = vrcp.f32 %v1516_v53  ;;  %v383_v2 = vsel %vm1535_vm2, %v1386_v4, %v1510_v33  ;;  %vm1552_vm1 = vmor %vm1943_vm9, %vm336_vm3  ;;  %v347_v19 = vsub.f32 1.0, %v1522_v0  ;;  %v392_v62 = vsub.f32 1.0, %v1526_v54 }
 0x22e   :  { %v557_v1 = vsub.f32 1.0, %v556_v52  ;;  %1116 = vrcp.f32 %v1518_v58  ;;  %v338_v4 = vsel %vm1552_vm1, %v1409_v13, %v1513_v51  ;;  %v477_v36 = vmul.f32 %v1105_v10, %v476_v55 }
 0x22f   :  { %vm1565_vm3 = vcmp.eq.f32.partialorder %v384_v16, 8.507059e+37  ;;  %vm560_vm6 = vweird.f32 %v1467_v5  ;;  %vm479_vm0 = vcmp.eq.f32.partialorder %v1442_v34, inf  ;;  %v513_v22 = vmul.f32 %v1107_v38, %v512_v18 }
 0x230   :  { %v558_v15 = vmul.f32 %v1113_v32, %v557_v1  ;;  %vm562_vm2 = vmor %vm560_vm6, %vm561_vm5  ;;  %v567_v23 = vor.u32 1.1754944e-38, %v566_v40  ;;  %v478_v13 = vmul.f32 %v477_v36, %v1442_v34  ;;  %vm481_vm9 = vcmp.eq.f32.partialorder %v1442_v34, 0.0 }
 0x231   :  { %v482_v10 = vand.u32 2147483648, %v1442_v34  ;;  %vm1576_vm1 = vcmp.eq.f32.partialorder %v339_v26, 8.507059e+37  ;;  %vm565_vm8 = vcmp.eq.f32.partialorder %v564_v17, 8.507059e+37  ;;  %v514_v5 = vmul.f32 %v513_v22, %v1453_v56 }
 0x232   :  { %v559_v11 = vadd.f32 %v1113_v32, %v558_v15  ;;  %vm515_vm5 = vcmp.eq.f32.partialorder %v1453_v56, inf  ;;  %v480_v28 = vsel %vm479_vm0, %v1442_v34, %v478_v13  ;;  %vm517_vm6 = vcmp.eq.f32.partialorder %v1453_v56, 0.0 }
 0x233   :  { %v1115_v24 = vpop.eup %1114  ;;  %v579_v26 = vand.u32 2147483647, %v1516_v53  ;;  %v483_v49 = vsel %vm481_vm9, %v482_v10, %v480_v28  ;;  %v516_v50 = vsel %vm515_vm5, %v1453_v56, %v514_v5  ;;  %v581_v51 = vand.u32 2147483648, %v1516_v53 }
 0x234   :  { %v563_v16 = vsel %vm562_vm2, %v1113_v32, %v559_v11  ;;  %v1117_v38 = vpop.eup %1116  ;;  %v571_v27 = vmul.f32 %v1115_v24, %v1516_v53  ;;  %v518_v32 = vand.u32 2147483648, %v1453_v56  ;;  %v1601_v0 = vadd.f32 1e-08, %v483_v49 }
 0x235   :  { %v1582_v25 = vsel %vm565_vm8, %v567_v23, %v563_v16  ;;  %v526_v31 = vmul.f32 %v1117_v38, %v1518_v58  ;;  %v536_v55 = vand.u32 2147483648, %v1518_v58  ;;  %vm531_vm8 = vweird.f32 %v1117_v38 }
 0x236   :  { %v607_v47 = vsel %vm1361_vm4, %v1582_v25, 0.0  ;;  %v572_v21 = vsub.f32 1.0, %v571_v27  ;;  %v519_v48 = vsel %vm517_vm6, %v518_v32, %v516_v50  ;;  %vm576_vm4 = vweird.f32 %v1115_v24  ;;  %v1048_v27 = vld [vmem:[#allocation2 + $0x8] sm:$0xff] }
 0x237   :  { %v1595_v33 = vadd.f32 %v607_v47, %v412_v30  ;;  %v527_v52 = vsub.f32 1.0, %v526_v31  ;;  %v1604_v57 = vadd.f32 1e-08, %v519_v48  ;;  %v534_v61 = vand.u32 2147483647, %v1518_v58 }
 0x238   :  { %v573_v54 = vmul.f32 %v1115_v24, %v572_v21  ;;  %1118 = vrcp.f32 %v1601_v0  ;;  %v1611_v34 = vsel %vm1565_vm3, %v1469_v6, %v383_v2  ;;  %vm575_vm0 = vweird.f32 %v1516_v53 }
 0x239   :  { %v528_v30 = vmul.f32 %v1117_v38, %v527_v52  ;;  %1120 = vrcp.f32 %v1604_v57  ;;  %v348_v1 = vmul.f32 %v1498_v46, %v347_v19  ;;  %vm577_vm2 = vmor %vm575_vm0, %vm576_vm4  ;;  %v582_v40 = vor.u32 1.1754944e-38, %v581_v51 }
 0x23a   :  { %v574_v56 = vadd.f32 %v1115_v24, %v573_v54  ;;  %vm530_vm9 = vweird.f32 %v1518_v58  ;;  %v1620_v15 = vsel %vm1576_vm1, %v1483_v14, %v338_v4  ;;  %vm580_vm3 = vcmp.eq.f32.partialorder %v579_v26, 8.507059e+37 }
 0x23b   :  { %v529_v8 = vadd.f32 %v1117_v38, %v528_v30  ;;  %vm532_vm5 = vmor %vm530_vm9, %vm531_vm8  ;;  %v537_v6 = vor.u32 1.1754944e-38, %v536_v55  ;;  %v393_v53 = vmul.f32 %v1504_v60, %v392_v62  ;;  %vm535_vm6 = vcmp.eq.f32.partialorder %v534_v61, 8.507059e+37 }
 0x23c   :  { %v578_v17 = vsel %vm577_vm2, %v1115_v24, %v574_v56  ;;  %v413_v58 = vsel %vm1299_vm10, %v1611_v34, 0.0  ;;  %vm351_vm4 = vweird.f32 %v1498_v46  ;;  %v410_v62 = vsel %vm1308_vm11, %v1620_v15, 0.0 }
 0x23d   :  { %v1624_v2 = vsel %vm580_vm3, %v582_v40, %v578_v17  ;;  %v533_v18 = vsel %vm532_vm5, %v1117_v38, %v529_v8  ;;  %v349_v36 = vadd.f32 %v1498_v46, %v348_v1  ;;  %vm350_vm10 = vweird.f32 %v1444_v39  ;;  %v1053_v40 = vld [vmem:[#allocation2 + $0x30] sm:$0xff] }
 0x23e   :  { %v608_v14 = vsel %vm1393_vm14, %v1624_v2, 0.0  ;;  %v1633_v4 = vsel %vm535_vm6, %v537_v6, %v533_v18  ;;  %v1119_v19 = vpop.eup %1118  ;;  %vm1650_vm14 = vcmp.eq.f32.partialorder %v354_v63, 8.507059e+37  ;;  %v394_v23 = vadd.f32 %v1504_v60, %v393_v53  ;;  %1057 = vmatpush.bf16.msra.mxu2 %v1053_v40  ;;  %883 = vmatpush.bf16.msra.mxu1 %v1053_v40 }
 0x23f   :  { %v1639_v20 = vadd.f32 %v608_v14, %v413_v58  ;;  %v605_v35 = vsel %vm1405_vm15, %v1633_v4, 0.0  ;;  %v1121_v11 = vpop.eup %1120  ;;  %v541_v22 = vmul.f32 %v1119_v19, %v1601_v0  ;;  %vm396_vm11 = vweird.f32 %v1504_v60  ;;  %vm1659_vm15 = vmor %vm350_vm10, %vm351_vm4  ;;  %1058 = vmatpush.bf16.msra.mxu3 %v1053_v40  ;;  %v1051_v58 = vld [vmem:[#allocation2 + $0x20] sm:$0xff] }
 0x240   :  { %v1645_v7 = vadd.f32 %v605_v35, %v410_v62  ;;  %v586_v12 = vmul.f32 %v1121_v11, %v1604_v57  ;;  %v357_v10 = vor.u32 1.1754944e-38, %v356_v29  ;;  %v399_v63 = vand.u32 2147483647, %v1446_v42  ;;  %v1050_v62 = vld [vmem:[#allocation2 + $0x18] sm:$0xff] }
 0x241   :  { %v401_v24 = vand.u32 2147483648, %v1446_v42  ;;  %v542_v41 = vsub.f32 1.0, %v541_v22  ;;  %v353_v16 = vsel %vm1659_vm15, %v1498_v46, %v349_v36  ;;  %vm395_vm1 = vweird.f32 %v1446_v42 }
 0x242   :  { %v551_v5 = vand.u32 2147483648, %v1601_v0  ;;  %v587_v38 = vsub.f32 1.0, %v586_v12  ;;  %vm1672_vm8 = vmor %vm395_vm1, %vm396_vm11  ;;  %vm546_vm0 = vweird.f32 %v1119_v19  ;;  %v549_v29 = vand.u32 2147483647, %v1601_v0  ;;  %1059 = vmatpush.bf16.msra.mxu2 %v1052_v45  ;;  %884 = vmatpush.bf16.msra.mxu1 %v1052_v45  ;;  %v1049_v12 = vld [vmem:[#allocation2 + $0x10] sm:$0xff] }
 0x243   :  { %v543_v39 = vmul.f32 %v1119_v19, %v542_v41  ;;  %v596_v28 = vand.u32 2147483648, %v1604_v57  ;;  %v398_v47 = vsel %vm1672_vm8, %v1504_v60, %v394_v23  ;;  %vm591_vm2 = vweird.f32 %v1121_v11  ;;  %1060 = vmatpush.bf16.msra.mxu3 %v1052_v45 }
 0x244   :  { %v588_v46 = vmul.f32 %v1121_v11, %v587_v38  ;;  %v594_v42 = vand.u32 2147483647, %v1604_v57  ;;  %vm400_vm9 = vcmp.eq.f32.partialorder %v399_v63, 8.507059e+37  ;;  %v402_v26 = vor.u32 1.1754944e-38, %v401_v24 }
 0x245   :  { %v544_v31 = vadd.f32 %v1119_v19, %v543_v39  ;;  %vm545_vm3 = vweird.f32 %v1601_v0  ;;  %v1685_v32 = vsel %vm1650_vm14, %v357_v10, %v353_v16  ;;  %v552_v21 = vor.u32 1.1754944e-38, %v551_v5 }
 0x246   :  { %vm547_vm5 = vmor %vm545_vm3, %vm546_vm0  ;;  %v589_v49 = vadd.f32 %v1121_v11, %v588_v46  ;;  %vm590_vm6 = vweird.f32 %v1604_v57  ;;  %v1688_v50 = vsel %vm400_vm9, %v402_v26, %v398_v47  ;;  %vm550_vm4 = vcmp.eq.f32.partialorder %v549_v29, 8.507059e+37  ;;  %1061 = vmatpush.bf16.msra.mxu2 %v1051_v58  ;;  %885 = vmatpush.bf16.msra.mxu1 %v1051_v58 }
 0x247   :  { %v548_v60 = vsel %vm547_vm5, %v1119_v19, %v544_v31  ;;  %vm592_vm10 = vmor %vm590_vm6, %vm591_vm2  ;;  %v597_v51 = vor.u32 1.1754944e-38, %v596_v28  ;;  %vm595_vm11 = vcmp.eq.f32.partialorder %v594_v42, 8.507059e+37  ;;  %v411_v0 = vsel %vm1319_vm12, %v1685_v32, 0.0  ;;  %1062 = vmatpush.bf16.msra.mxu3 %v1051_v58 }
 0x248   :  { %v1690_v52 = vsel %vm550_vm4, %v552_v21, %v548_v60  ;;  %v593_v48 = vsel %vm592_vm10, %v1121_v11, %v589_v49  ;;  %v414_v57 = vsel %vm1329_vm13, %v1688_v50, 0.0  ;;  %vm1956_vm14 = vnez %v1939_v9  ;;  %v1047_v21 = vld [vmem:[#allocation2] sm:$0xff] }
 0x249   :  { %v606_v54 = vsel %vm1458_vm7, %v1690_v52, 0.0  ;;  %v1698_v55 = vsel %vm595_vm11, %v597_v51, %v593_v48 }
 0x24a   :  { %v1703_v30 = vadd.f32 %v606_v54, %v411_v0  ;;  %v609_v61 = vsel %vm1956_vm14, %v1698_v55, 0.0  ;;  %1063 = vmatpush.bf16.msra.mxu2 %v1050_v62  ;;  %886 = vmatpush.bf16.msra.mxu1 %v1050_v62 }
 0x24b   :  { %v1708_v56 = vadd.f32 %v609_v61, %v414_v57  ;;  %1064 = vmatpush.bf16.msra.mxu3 %v1050_v62 }
 0x24e   :  { %1065 = vmatpush.bf16.msra.mxu2 %v1049_v12  ;;  %887 = vmatpush.bf16.msra.mxu1 %v1049_v12 }
 0x24f   :  { %1066 = vmatpush.bf16.msra.mxu3 %v1049_v12 }
 0x252   :  { %1067 = vmatpush.bf16.msra.mxu2 %v1048_v27  ;;  %888 = vmatpush.bf16.msra.mxu1 %v1048_v27 }
 0x253   :  { %1068 = vmatpush.bf16.msra.mxu3 %v1048_v27 }
 0x256   :  { %1069 = vmatpush.bf16.msra.mxu2 %v1047_v21  ;;  %889 = vmatpush.bf16.msra.mxu1 %v1047_v21 }
 0x257   :  { %1070 = vmatpush.bf16.msra.mxu3 %v1047_v21 }
 0x283   :  { %v1710_v1 = vpop.xlane.xlu0 %629 }
 0x284   :  { %v647_v59 = vand.u32 4294967168, %v1710_v1 }
 0x286   :  { %1122 = vrsqrt.f32 %v647_v59  ;;  %vm686_vm12 = vcmp.eq.f32.partialorder %v647_v59, inf  ;;  %v689_v16 = vand.u32 2147483648, %v647_v59  ;;  %vm688_vm13 = vcmp.eq.f32.partialorder %v647_v59, 0.0 }
 0x28b   :  { %v1713_v8 = vpop.xlane.xlu2 %631  ;;  %v1715_v17 = vpop.xlane.xlu0 %625 }
 0x28c   :  { %v1123_v9 = vpop.eup %1122  ;;  %v1718_v6 = vand.u32 4294967168, %v1713_v8  ;;  %v1721_v18 = vand.u32 4294967168, %v1715_v17 }
 0x28d   :  { %v680_v53 = vmul.f32 %v1123_v9, %v647_v59 }
 0x28e   :  { %1124 = vrsqrt.f32 %v1718_v6  ;;  %vm698_vm7 = vcmp.eq.f32.partialorder %v1718_v6, inf  ;;  %vm700_vm15 = vcmp.eq.f32.partialorder %v1718_v6, 0.0  ;;  %v701_v54 = vand.u32 2147483648, %v1718_v6 }
 0x28f   :  { %v681_v14 = vmul.f32 %v1123_v9, %v680_v53  ;;  %1126 = vrsqrt.f32 %v1721_v18  ;;  %vm662_vm1 = vcmp.eq.f32.partialorder %v1721_v18, inf  ;;  %v665_v57 = vand.u32 2147483648, %v1721_v18 }
 0x290   :  { %vm664_vm8 = vcmp.eq.f32.partialorder %v1721_v18, 0.0 }
 0x291   :  { %v682_v19 = vmul.f32 0.5, %v681_v14 }
 0x293   :  { %v683_v36 = vsub.f32 1.5, %v682_v19  ;;  %v1726_v23 = vpop.xlane.xlu2 %627 }
 0x294   :  { %v1125_v35 = vpop.eup %1124  ;;  %v1730_v10 = vand.u32 4294967168, %v1726_v23 }
 0x295   :  { %v1127_v11 = vpop.eup %1126  ;;  %v684_v22 = vmul.f32 %v1123_v9, %v683_v36  ;;  %v692_v37 = vmul.f32 %v1125_v35, %v1718_v6 }
 0x296   :  { %v656_v13 = vmul.f32 %v1127_v11, %v1721_v18  ;;  %1128 = vrsqrt.f32 %v1730_v10  ;;  %v1733_v38 = vpop.xlane.xlu1 %633  ;;  %vm674_vm0 = vcmp.eq.f32.partialorder %v1730_v10, inf  ;;  %vm676_vm2 = vcmp.eq.f32.partialorder %v1730_v10, 0.0 }
 0x297   :  { %v685_v63 = vmul.f32 %v684_v22, %v647_v59  ;;  %v693_v24 = vmul.f32 %v1125_v35, %v692_v37  ;;  %v1736_v28 = vand.u32 4294967168, %v1733_v38  ;;  %v642_v22 = vand.u32 127, %v1710_v1 }
 0x298   :  { %v657_v41 = vmul.f32 %v1127_v11, %v656_v13  ;;  %v677_v1 = vand.u32 2147483648, %v1730_v10 }
 0x299   :  { %v694_v5 = vmul.f32 0.5, %v693_v24  ;;  %v687_v39 = vsel %vm686_vm12, %v647_v59, %v685_v63  ;;  %1130 = vrsqrt.f32 %v1736_v28  ;;  %v1770_v63 = vadd.f32 %v1633_v4, %v1620_v15 }
 0x29a   :  { %v658_v29 = vmul.f32 0.5, %v657_v41  ;;  %v690_v47 = vsel %vm688_vm13, %v689_v16, %v687_v39  ;;  %v643_v24 = vand.u32 127, %v1713_v8  ;;  %vm710_vm3 = vcmp.eq.f32.partialorder %v1736_v28, inf }
 0x29b   :  { %v695_v46 = vsub.f32 1.5, %v694_v5  ;;  %v1738_v42 = vadd.f32 1e-08, %v690_v47  ;;  %vm1781_vm5 = vcmp.eq.s32.totalorder %v1281_v3, %v642_v22  ;;  %vm712_vm4 = vcmp.eq.f32.partialorder %v1736_v28, 0.0 }
 0x29c   :  { %v659_v26 = vsub.f32 1.5, %v658_v29  ;;  %v1129_v49 = vpop.eup %1128  ;;  %v713_v47 = vand.u32 2147483648, %v1736_v28  ;;  %vm1808_vm13 = vcmp.eq.s32.totalorder %v1281_v3, %v643_v24 }
 0x29d   :  { %v696_v31 = vmul.f32 %v1125_v35, %v695_v46  ;;  %1132 = vrcp.f32 %v1738_v42  ;;  %v668_v48 = vmul.f32 %v1129_v49, %v1730_v10  ;;  %v761_v41 = vand.u32 2147483648, %v1738_v42 }
 0x29e   :  { %v660_v60 = vmul.f32 %v1127_v11, %v659_v26  ;;  %vm755_vm6 = vweird.f32 %v1738_v42 }
 0x29f   :  { %v697_v51 = vmul.f32 %v696_v31, %v1718_v6  ;;  %v669_v61 = vmul.f32 %v1129_v49, %v668_v48  ;;  %v1131_v59 = vpop.eup %1130 }
 0x2a0   :  { %v661_v0 = vmul.f32 %v660_v60, %v1721_v18  ;;  %v704_v58 = vmul.f32 %v1131_v59, %v1736_v28 }
 0x2a1   :  { %v699_v43 = vsel %vm698_vm7, %v1718_v6, %v697_v51  ;;  %v670_v14 = vmul.f32 0.5, %v669_v61  ;;  %v617_v6 = vadd.f32 %v1582_v25, %v1479_v44 }
 0x2a2   :  { %v663_v40 = vsel %vm662_vm1, %v1721_v18, %v661_v0  ;;  %v702_v45 = vsel %vm700_vm15, %v701_v54, %v699_v43  ;;  %v705_v35 = vmul.f32 %v1131_v59, %v704_v58  ;;  %v1764_v18 = vadd.f32 %v1624_v2, %v1611_v34 }
 0x2a3   :  { %v1133_v9 = vpop.eup %1132  ;;  %v666_v53 = vsel %vm664_vm8, %v665_v57, %v663_v40  ;;  %v1754_v19 = vadd.f32 1e-08, %v702_v45  ;;  %v671_v11 = vsub.f32 1.5, %v670_v14  ;;  %v759_v2 = vand.u32 2147483647, %v1738_v42 }
 0x2a4   :  { %v1756_v62 = vadd.f32 1e-08, %v666_v53  ;;  %v751_v36 = vmul.f32 %v1133_v9, %v1738_v42  ;;  %v706_v37 = vmul.f32 0.5, %v705_v35  ;;  %vm756_vm9 = vweird.f32 %v1133_v9 }
 0x2a5   :  { %1134 = vrcp.f32 %v1754_v19  ;;  %v672_v12 = vmul.f32 %v1129_v49, %v671_v11  ;;  %vm757_vm10 = vmor %vm755_vm6, %vm756_vm9  ;;  %vm760_vm11 = vcmp.eq.f32.partialorder %v759_v2, 8.507059e+37  ;;  %v774_v51 = vand.u32 2147483647, %v1754_v19 }
 0x2a6   :  { %1136 = vrcp.f32 %v1756_v62  ;;  %v752_v13 = vsub.f32 1.0, %v751_v36  ;;  %v707_v44 = vsub.f32 1.5, %v706_v37  ;;  %v731_v42 = vand.u32 2147483648, %v1756_v62 }
 0x2a7   :  { %v673_v25 = vmul.f32 %v672_v12, %v1730_v10  ;;  %v776_v48 = vand.u32 2147483648, %v1754_v19  ;;  %v729_v43 = vand.u32 2147483647, %v1756_v62  ;;  %vm770_vm7 = vweird.f32 %v1754_v19 }
 0x2a8   :  { %v753_v34 = vmul.f32 %v1133_v9, %v752_v13  ;;  %v708_v8 = vmul.f32 %v1131_v59, %v707_v44  ;;  %vm725_vm15 = vweird.f32 %v1756_v62  ;;  %v732_v36 = vor.u32 1.1754944e-38, %v731_v42 }
 0x2a9   :  { %v675_v16 = vsel %vm674_vm0, %v1730_v10, %v673_v25  ;;  %v762_v10 = vor.u32 1.1754944e-38, %v761_v41  ;;  %v777_v58 = vor.u32 1.1754944e-38, %v776_v48  ;;  %vm775_vm0 = vcmp.eq.f32.partialorder %v774_v51, 8.507059e+37 }
 0x2aa   :  { %v754_v5 = vadd.f32 %v1133_v9, %v753_v34  ;;  %v678_v39 = vsel %vm676_vm2, %v677_v1, %v675_v16  ;;  %v709_v26 = vmul.f32 %v708_v8, %v1736_v28  ;;  %vm730_vm2 = vcmp.eq.f32.partialorder %v729_v43, 8.507059e+37 }
 0x2ab   :  { %v1135_v15 = vpop.eup %1134  ;;  %v1794_v31 = vadd.f32 1e-08, %v678_v39  ;;  %v640_v34 = vand.u32 127, %v1715_v17 }
 0x2ac   :  { %v1137_v27 = vpop.eup %1136  ;;  %v766_v29 = vmul.f32 %v1135_v15, %v1754_v19  ;;  %v758_v21 = vsel %vm757_vm10, %v1133_v9, %v754_v5  ;;  %vm771_vm14 = vweird.f32 %v1135_v15  ;;  %v711_v57 = vsel %vm710_vm3, %v1736_v28, %v709_v26 }
 0x2ad   :  { %v721_v46 = vmul.f32 %v1137_v27, %v1756_v62  ;;  %1138 = vrcp.f32 %v1794_v31  ;;  %v763_v0 = vsel %vm760_vm11, %v762_v10, %v758_v21  ;;  %vm726_vm12 = vweird.f32 %v1137_v27  ;;  %vm772_vm1 = vmor %vm770_vm7, %vm771_vm14 }
 0x2ae   :  { %v767_v49 = vsub.f32 1.0, %v766_v29  ;;  %v1805_v59 = vadd.f32 %v763_v0, %v617_v6  ;;  %v714_v9 = vsel %vm712_vm4, %v713_v47, %v711_v57  ;;  %vm727_vm8 = vmor %vm725_vm15, %vm726_vm12  ;;  %v802_v11 = vsel %vm1781_vm5, %v763_v0, 0.0 }
 0x2af   :  { %v722_v60 = vsub.f32 1.0, %v721_v46  ;;  %v719_v14 = vadd.f32 1e-08, %v714_v9  ;;  %v807_v13 = vadd.f32 %v802_v11, %v1595_v33  ;;  %v746_v2 = vand.u32 2147483648, %v1794_v31 }
 0x2b0   :  { %v768_v54 = vmul.f32 %v1135_v15, %v767_v49  ;;  %vm740_vm3 = vweird.f32 %v1794_v31  ;;  %vm1837_vm5 = vcmp.eq.s32.totalorder %v1281_v3, %v640_v34  ;;  %v644_v46 = vand.u32 127, %v1733_v38 }
 0x2b1   :  { %v723_v61 = vmul.f32 %v1137_v27, %v722_v60  ;;  %1140 = vrcp.f32 %v719_v14  ;;  %v747_v8 = vor.u32 1.1754944e-38, %v746_v2  ;;  %v789_v39 = vand.u32 2147483647, %v719_v14 }
 0x2b2   :  { %v769_v45 = vadd.f32 %v1135_v15, %v768_v54  ;;  %v791_v29 = vand.u32 2147483648, %v719_v14  ;;  %vm785_vm14 = vweird.f32 %v719_v14  ;;  %v619_v49 = vadd.f32 %v1698_v55, %v1688_v50 }
 0x2b3   :  { %v724_v53 = vadd.f32 %v1137_v27, %v723_v61  ;;  %v1139_v6 = vpop.eup %1138  ;;  %vm799_vm7 = vcmp.eq.s32.totalorder %v1281_v3, %v644_v46  ;;  %1142 = vrcp.f32 %v1805_v59 }
 0x2b4   :  { %v773_v35 = vsel %vm772_vm1, %v1135_v15, %v769_v45  ;;  %v736_v37 = vmul.f32 %v1139_v6, %v1794_v31  ;;  %vm741_vm9 = vweird.f32 %v1139_v6  ;;  %v744_v15 = vand.u32 2147483647, %v1794_v31 }
 0x2b5   :  { %v728_v22 = vsel %vm727_vm8, %v1137_v27, %v724_v53  ;;  %v778_v19 = vsel %vm775_vm0, %v777_v58, %v773_v35  ;;  %vm742_vm6 = vmor %vm740_vm3, %vm741_vm9  ;;  %v792_v10 = vor.u32 1.1754944e-38, %v791_v29  ;;  %vm940_vm1 = vweird.f32 %v1805_v59 }
 0x2b6   :  { %v733_v28 = vsel %vm730_vm2, %v732_v36, %v728_v22  ;;  %v803_v62 = vsel %vm1808_vm13, %v778_v19, 0.0  ;;  %v1827_v44 = vadd.f32 %v778_v19, %v1764_v18  ;;  %v737_v25 = vsub.f32 1.0, %v736_v37 }
 0x2b7   :  { %v1822_v12 = vadd.f32 %v733_v28, %v1770_v63  ;;  %v808_v24 = vadd.f32 %v803_v62, %v1639_v20  ;;  %v1141_v4 = vpop.eup %1140  ;;  %v641_v63 = vand.u32 127, %v1726_v23  ;;  %v616_v18 = vadd.f32 %v1690_v52, %v1685_v32 }
 0x2b8   :  { %v738_v41 = vmul.f32 %v1139_v6, %v737_v25  ;;  %v781_v20 = vmul.f32 %v1141_v4, %v719_v14  ;;  %v800_v16 = vsel %vm1837_vm5, %v733_v28, 0.0  ;;  %vm745_vm4 = vcmp.eq.f32.partialorder %v744_v15, 8.507059e+37 }
 0x2b9   :  { %v816_v1 = vpack.c.bf16 %v808_v24, %v807_v13  ;;  %vm796_vm10 = vcmp.eq.s32.totalorder %v1281_v3, %v641_v63  ;;  %vm786_vm11 = vweird.f32 %v1141_v4  ;;  %v805_v26 = vadd.f32 %v800_v16, %v1645_v7  ;;  %v1143_v0 = vpop.eup %1142 }
 0x2ba   :  { %v739_v33 = vadd.f32 %v1139_v6, %v738_v41  ;;  %v782_v23 = vsub.f32 1.0, %v781_v20  ;;  %vm787_vm12 = vmor %vm785_vm14, %vm786_vm11  ;;  %vm790_vm13 = vcmp.eq.f32.partialorder %v789_v39, 8.507059e+37  ;;  %1144 = vrcp.f32 %v1822_v12 }
 0x2bb   :  { %895 = vmatmul.bf16.vlgmr.msra.gmra.mxu2 %v816_v1  ;;  %1146 = vrcp.f32 %v1827_v44  ;;  %v936_v50 = vmul.f32 %v1143_v0, %v1805_v59  ;;  %vm941_vm15 = vweird.f32 %v1143_v0  ;;  %v946_v36 = vand.u32 2147483648, %v1805_v59 }
 0x2bc   :  { %v743_v5 = vsel %vm742_vm6, %v1139_v6, %v739_v33  ;;  %v783_v52 = vmul.f32 %v1141_v4, %v782_v23  ;;  %v944_v35 = vand.u32 2147483647, %v1805_v59  ;;  %vm942_vm8 = vmor %vm940_vm1, %vm941_vm15  ;;  %v916_v62 = vand.u32 2147483648, %v1822_v12 }
 0x2bd   :  { %v748_v27 = vsel %vm745_vm4, %v747_v8, %v743_v5  ;;  %v937_v54 = vsub.f32 1.0, %v936_v50  ;;  %v947_v37 = vor.u32 1.1754944e-38, %v946_v36  ;;  %vm910_vm9 = vweird.f32 %v1822_v12 }
 0x2be   :  { %v801_v47 = vsel %vm796_vm10, %v748_v27, 0.0  ;;  %v1844_v32 = vadd.f32 %v748_v27, %v616_v18  ;;  %v784_v42 = vadd.f32 %v1141_v4, %v783_v52  ;;  %vm945_vm2 = vcmp.eq.f32.partialorder %v944_v35, 8.507059e+37 }
 0x2bf   :  { %v806_v31 = vadd.f32 %v801_v47, %v1703_v30  ;;  %v938_v61 = vmul.f32 %v1143_v0, %v937_v54  ;;  %v914_v13 = vand.u32 2147483647, %v1822_v12  ;;  %vm955_vm6 = vweird.f32 %v1827_v44 }
 0x2c0   :  { %v788_v60 = vsel %vm787_vm12, %v1141_v4, %v784_v42  ;;  %v1145_v55 = vpop.eup %1144  ;;  %1148 = vrcp.f32 %v1844_v32  ;;  %v917_v4 = vor.u32 1.1754944e-38, %v916_v62  ;;  %v959_v33 = vand.u32 2147483647, %v1827_v44 }
 0x2c1   :  { %v815_v21 = vpack.c.bf16 %v806_v31, %v805_v26  ;;  %v793_v51 = vsel %vm790_vm13, %v792_v10, %v788_v60  ;;  %v1147_v3 = vpop.eup %1146  ;;  %v906_v57 = vmul.f32 %v1145_v55, %v1822_v12  ;;  %v939_v9 = vadd.f32 %v1143_v0, %v938_v61 }
 0x2c2   :  { %v804_v48 = vsel %vm799_vm7, %v793_v51, 0.0  ;;  %v1852_v38 = vadd.f32 %v793_v51, %v619_v49  ;;  %vm911_vm0 = vweird.f32 %v1145_v55  ;;  %vm956_vm5 = vweird.f32 %v1147_v3 }
 0x2c3   :  { %890 = vmatmul.bf16.vlgmr.msra.gmra.mxu1 %v815_v21  ;;  %v809_v7 = vadd.f32 %v804_v48, %v1708_v56  ;;  %v951_v56 = vmul.f32 %v1147_v3, %v1827_v44  ;;  %v907_v43 = vsub.f32 1.0, %v906_v57  ;;  %v943_v6 = vsel %vm942_vm8, %v1143_v0, %v939_v9  ;;  %vm1877_vm3 = vmor %vm910_vm9, %vm911_vm0 }
 0x2c4   :  { %1150 = vrcp.f32 %v1852_v38  ;;  %v948_v25 = vsel %vm945_vm2, %v947_v37, %v943_v6  ;;  %v961_v12 = vand.u32 2147483648, %v1827_v44  ;;  %vm915_vm4 = vcmp.eq.f32.partialorder %v914_v13, 8.507059e+37  ;;  %vm1886_vm10 = vmor %vm955_vm6, %vm956_vm5 }
 0x2c5   :  { %v817_v30 = vpack.c.bf16 %v809_v7, %v809_v7  ;;  %v952_v45 = vsub.f32 1.0, %v951_v56  ;;  %v908_v53 = vmul.f32 %v1145_v55, %v907_v43  ;;  %v931_v27 = vand.u32 2147483648, %v1844_v32 }
 0x2c6   :  { %v1863_v40 = vpop.eup %1148  ;;  %v962_v23 = vor.u32 1.1754944e-38, %v961_v12  ;;  %vm960_vm14 = vcmp.eq.f32.partialorder %v959_v33, 8.507059e+37  ;;  %vm925_vm12 = vweird.f32 %v1844_v32  ;;  %v929_v44 = vand.u32 2147483647, %v1844_v32 }
 0x2c7   :  { %900 = vmatmul.bf16.vlgmr.msra.gmra.mxu3 %v817_v30  ;;  %v921_v58 = vmul.f32 %v1863_v40, %v1844_v32  ;;  %v953_v11 = vmul.f32 %v1147_v3, %v952_v45  ;;  %v909_v22 = vadd.f32 %v1145_v55, %v908_v53  ;;  %vm926_vm11 = vweird.f32 %v1863_v40 }
 0x2c8   :  { %vm927_vm13 = vmor %vm925_vm12, %vm926_vm11  ;;  %v976_v26 = vand.u32 2147483648, %v1852_v38  ;;  %v932_v31 = vor.u32 1.1754944e-38, %v931_v27  ;;  %vm970_vm15 = vweird.f32 %v1852_v38  ;;  %v974_v42 = vand.u32 2147483647, %v1852_v38 }
 0x2c9   :  { %v922_v28 = vsub.f32 1.0, %v921_v58  ;;  %v954_v34 = vadd.f32 %v1147_v3, %v953_v11  ;;  %v913_v1 = vsel %vm1877_vm3, %v1145_v55, %v909_v22  ;;  %vm930_vm1 = vcmp.eq.f32.partialorder %v929_v44, 8.507059e+37 }
 0x2ca   :  { %v1867_v14 = vpop.eup %1150  ;;  %v918_v18 = vsel %vm915_vm4, %v917_v4, %v913_v1  ;;  %v977_v60 = vor.u32 1.1754944e-38, %v976_v26  ;;  %vm975_vm0 = vcmp.eq.f32.partialorder %v974_v42, 8.507059e+37 }
 0x2cb   :  { %v966_v19 = vmul.f32 %v1867_v14, %v1852_v38  ;;  %v923_v15 = vmul.f32 %v1863_v40, %v922_v28  ;;  %v958_v17 = vsel %vm1886_vm10, %v1147_v3, %v954_v34  ;;  %vm971_vm7 = vweird.f32 %v1867_v14 }
 0x2cc   :  { %v963_v29 = vsel %vm960_vm14, %v962_v23, %v958_v17  ;;  %vm972_vm8 = vmor %vm970_vm15, %vm971_vm7 }
 0x2cd   :  { %v967_v41 = vsub.f32 1.0, %v966_v19  ;;  %v924_v5 = vadd.f32 %v1863_v40, %v923_v15 }
 0x2cf   :  { %v968_v16 = vmul.f32 %v1867_v14, %v967_v41  ;;  %v928_v46 = vsel %vm927_vm13, %v1863_v40, %v924_v5 }
 0x2d0   :  { %v933_v21 = vsel %vm930_vm1, %v932_v31, %v928_v46 }
 0x2d1   :  { %v969_v52 = vadd.f32 %v1867_v14, %v968_v16 }
 0x2d3   :  { %v973_v10 = vsel %vm972_vm8, %v1867_v14, %v969_v52 }
 0x2d4   :  { %v978_v48 = vsel %vm975_vm0, %v977_v60, %v973_v10 }
 0x33e   :  { %v896_v24 = vpop.f32.mrf.mxu2 }
 0x33f   :  { %v982_v2 = vmul.f32 %v948_v25, %v896_v24 }
 0x340   :  { %v891_v20 = vpop.f32.mrf.mxu1 }
 0x341   :  { %987 = vst [vmem:[#allocation5 + $0x10] sm:$0xff] %v982_v2  ;;  %v980_v8 = vmul.f32 %v918_v18, %v891_v20 }
 0x343   :  { %985 = vst [vmem:[#allocation5] sm:$0xff] %v980_v8 }
 0x346   :  { %v898_v39 = vpop.f32.mrf.mxu2 }
 0x347   :  { %v983_v47 = vmul.f32 %v963_v29, %v898_v39 }
 0x348   :  { %v893_v32 = vpop.f32.mrf.mxu1 }
 0x349   :  { %988 = vst [vmem:[#allocation5 + $0x18] sm:$0xff] %v983_v47  ;;  %v981_v49 = vmul.f32 %v933_v21, %v893_v32 }
 0x34a   :  { %v901_v51 = vpop.f32.mrf.mxu3 }
 0x34b   :  { %986 = vst [vmem:[#allocation5 + $0x8] sm:$0xff] %v981_v49  ;;  %v984_v38 = vmul.f32 %v978_v48, %v901_v51 }
 0x34d   :  { %989 = vst [vmem:[#allocation5 + $0x20] sm:$0xff] %v984_v38 }
 0x34e   :  { %1002 = dma.vmem_to_hbm [thread:$0]  %s995_s1, 640, %s997_s16, [#allocation4], %s1210_s17, %s1210_s17, %s1211_s18  }
 0x352   :  { %v903_v7 = vpop.f32.mrf.mxu3 }
 0x353   :  { %1202 = dma.done.wait [#allocation4], 640  }
 0x354   :  { %1203 = vsyncadd [#allocation4], 4294966656 }
 0x355   :  { %1007 = vsyncpa [#allocation3], 1 }
 0x356   :  { %1008 = vsyncpa [#allocation4], 1 }

</bundles_post_ra>
